<compile_context>
chip_gen: v5e
topology: v5e:2x2
jax: 0.10.0
libtpu: 0.0.40
codegen_flags: <defaults>
</compile_context>

<pallas_src>
import functools

import jax
import jax.numpy as jnp
from jax.experimental import pallas as pl
from jax.experimental.pallas import tpu as pltpu


def _round_up(x, m):
    return ((x + m - 1) // m) * m


# ---------------------------------------------------------------------------
# Pallas kernel: recurrence + batched decoder (input projection precomputed)
# ---------------------------------------------------------------------------
def _lstm_decoder_kernel(gx_ref, h0_ref, c0_ref, whh_ref, wdec_ref, bdec_ref,
                         dec_ref, hn_ref, cn_ref,
                         hseq_s, *, seq_len, b_pad, hidden):
    T, Bp, H = seq_len, b_pad, hidden

    h = h0_ref[...]          # (Bp, H) f32 -- loop-carried values (vregs), not scratch
    c = c0_ref[...]          # (Bp, H) f32

    # Serial recurrence, fully unrolled (T is small & static).  Only h @ W_hh remains
    # on the serial critical path; gates are densely packed to 4*H lanes and W_hh is
    # bf16 (f32 accumulate), halving both MXU output width and per-step weight reads.
    for t in range(T):
        row = t * Bp
        gates = gx_ref[pl.ds(row, Bp), :] + jnp.dot(
            h.astype(jnp.bfloat16), whh_ref[...],
            preferred_element_type=jnp.float32)              # (Bp, 4*H) f32

        i_g = jax.nn.sigmoid(gates[:, 0 * H:1 * H])
        f_g = jax.nn.sigmoid(gates[:, 1 * H:2 * H])
        g_g = jnp.tanh(gates[:, 2 * H:3 * H])
        o_g = jax.nn.sigmoid(gates[:, 3 * H:4 * H])

        c = f_g * c + i_g * g_g
        h = o_g * jnp.tanh(c)

        hseq_s[pl.ds(row, Bp), :] = h   # stash h_t for the single batched decode

    hn_ref[...] = h
    cn_ref[...] = c

    # Batched lane-dense decoder: ONE bf16 matmul (f32 accumulate) over all T*Bp
    # hidden vectors, one 128-lane-dense store.
    dec_ref[...] = (jnp.dot(hseq_s[...].astype(jnp.bfloat16), wdec_ref[...],
                            preferred_element_type=jnp.float32)
                    + bdec_ref[...]).astype(dec_ref.dtype)


# ---------------------------------------------------------------------------
# pallas_call wrapper (everything VMEM-resident, no grid)
# ---------------------------------------------------------------------------
def run_lstm_decoder(gx, h0, c0, whh_bf16, wdec_bf16, bdec):
    """gx: (T, B, 4H) f32 precomputed gate pre-activations (inputs + bias);
    h0/c0: (B, H) f32; whh_bf16: (H, 4H) bf16; wdec_bf16: (H, Cp) bf16; bdec: (1, Cp) f32.
    Returns (dec (T*Bp, Cp) f32, h_n (Bp, H) f32, c_n (Bp, H) f32), batch-padded."""
    T, B, G = gx.shape
    H = h0.shape[-1]
    Cp = wdec_bf16.shape[-1]
    Bp = _round_up(B, 8)       # pad batch to sublane granularity
    f32 = jnp.float32

    gx_p = jnp.pad(gx.astype(f32), ((0, 0), (0, Bp - B), (0, 0))).reshape(T * Bp, G)
    h0_p = jnp.pad(h0.astype(f32), ((0, Bp - B), (0, 0)))
    c0_p = jnp.pad(c0.astype(f32), ((0, Bp - B), (0, 0)))

    kernel = functools.partial(_lstm_decoder_kernel, seq_len=T, b_pad=Bp, hidden=H)
    vmem = lambda: pl.BlockSpec(memory_space=pltpu.MemorySpace.VMEM)

    return pl.pallas_call(
        kernel,
        out_shape=(
            jax.ShapeDtypeStruct((T * Bp, Cp), f32),   # decoded (padded, lane dense)
            jax.ShapeDtypeStruct((Bp, H), f32),        # h_n (batch padded)
            jax.ShapeDtypeStruct((Bp, H), f32),        # c_n (batch padded)
        ),
        in_specs=[vmem() for _ in range(6)],
        out_specs=(vmem(), vmem(), vmem()),
        scratch_shapes=[
            pltpu.VMEM((T * Bp, H), f32),              # h_t sequence for batched decode
        ],
    )(gx_p, h0_p, c0_p, whh_bf16, wdec_bf16, bdec)


# ---------------------------------------------------------------------------
# One-time weight packing (hoisted out of the per-call path)
# ---------------------------------------------------------------------------
def prepare_packed_params(params):
    """Fold embeddings into gate lookup tables and pre-pack the recurrent/decoder
    weights.  Done ONCE; only tiny gathers/pads remain per call."""
    hi = jax.lax.Precision.HIGHEST
    f32 = jnp.float32

    w_ih = params["w_ih"].astype(f32)          # (4H, D), PyTorch i|f|g|o gate order
    G = w_ih.shape[0]                          # 4*H (densely packed gate lanes)
    e0 = params["speaker_emb"].shape[1]
    e1 = params["da_emb"].shape[1]
    e2 = params["level_emb"].shape[1]
    o1, o2, o3 = e0, e0 + e1, e0 + e1 + e2     # utterance_length is input column o3

    C = params["w_dec"].shape[0]
    Cp = _round_up(C, 128)                     # lane-dense decoder output

    return {
        # Per-vocab gate tables: E_k @ W_ih_k^T  (exact f32, <20 KiB total)
        "speaker_tab": jnp.dot(params["speaker_emb"].astype(f32), w_ih[:, :o1].T, precision=hi),
        "da_tab": jnp.dot(params["da_emb"].astype(f32), w_ih[:, o1:o2].T, precision=hi),
        "level_tab": jnp.dot(params["level_emb"].astype(f32), w_ih[:, o2:o3].T, precision=hi),
        "ul_row": w_ih[:, o3].reshape(1, 1, G),                    # utterance-length column
        "gate_bias": (params["b_ih"] + params["b_hh"]).astype(f32).reshape(1, 1, G),
        # Recurrent / decoder weights: transposed, densely gate-packed, bf16 MXU operands
        "whh_bf16": params["w_hh"].astype(f32).T.astype(jnp.bfloat16),               # (H, 4H)
        "wdec_bf16": jnp.pad(params["w_dec"].astype(f32).T,
                             ((0, 0), (0, Cp - C))).astype(jnp.bfloat16),            # (H, Cp)
        "bdec": jnp.pad(params["b_dec"].astype(f32).reshape(1, C), ((0, 0), (0, Cp - C))),
    }


def _gx_from_packed(packed, data):
    """Gate pre-activations from inputs: 3 tiny row-gathers + scaled column + bias."""
    idx = data.astype(jnp.int32)
    return (jnp.take(packed["speaker_tab"], idx[:, :, 0], axis=0)
            + jnp.take(packed["da_tab"], idx[:, :, 1], axis=0)
            + jnp.take(packed["level_tab"], idx[:, :, 2], axis=0)
            + idx[:, :, 3].astype(jnp.float32)[..., None] * packed["ul_row"]
            + packed["gate_bias"])                                 # (T, B, 4H) f32


def make_lstm_forward(params):
    """Returns (jitted forward, packed params).  Packing runs once, here."""
    packed = prepare_packed_params(params)
    C = int(params["w_dec"].shape[0])
    Cp = int(packed["wdec_bf16"].shape[1])

    @jax.jit
    def forward(data, hidden_state):
        """data: (T, B, 4) integer codes; hidden_state: (h0, c0) each (1, B, H)."""
        T, B = data.shape[0], data.shape[1]
        Bp = _round_up(B, 8)
        gx = _gx_from_packed(packed, data)
        h0, c0 = hidden_state
        dec_p, hn_p, cn_p = run_lstm_decoder(
            gx, h0[0].astype(jnp.float32), c0[0].astype(jnp.float32),
            packed["whh_bf16"], packed["wdec_bf16"], packed["bdec"])
        decoded = dec_p.reshape(T, Bp, Cp)[:, :B, :C]
        return decoded, (hn_p[:B][None], cn_p[:B][None])

    return forward, packed


# ---------------------------------------------------------------------------
# Module parameters (embedding glue identical to the PyTorch module)
# ---------------------------------------------------------------------------
def init_params(key,
                input_dimensions=(2, 13, 4),
                embedding_dimensions=(4, 20, 10),
                hidden_nodes=64,
                n_classes=13):
    ks = jax.random.split(key, 9)
    input_dim = sum(embedding_dimensions) + 1  # speaker + DA + level + utterance_length
    H = hidden_nodes
    stdv = 1.0 / jnp.sqrt(H)
    params = {
        "speaker_emb": jax.random.normal(ks[0], (input_dimensions[0], embedding_dimensions[0]), jnp.float32),
        "da_emb": jax.random.normal(ks[1], (input_dimensions[1], embedding_dimensions[1]), jnp.float32),
        "level_emb": jax.random.normal(ks[2], (input_dimensions[2], embedding_dimensions[2]), jnp.float32),
        "w_ih": jax.random.uniform(ks[3], (4 * H, input_dim), jnp.float32, -stdv, stdv),
        "w_hh": jax.random.uniform(ks[4], (4 * H, H), jnp.float32, -stdv, stdv),
        "b_ih": jax.random.uniform(ks[5], (4 * H,), jnp.float32, -stdv, stdv),
        "b_hh": jax.random.uniform(ks[6], (4 * H,), jnp.float32, -stdv, stdv),
        "w_dec": jax.random.uniform(ks[7], (n_classes, H), jnp.float32, -stdv, stdv),
        "b_dec": jax.random.uniform(ks[8], (n_classes,), jnp.float32, -stdv, stdv),
    }
    return params, input_dim


def _embed(params, data):
    data = data.astype(jnp.int32)
    sp = jnp.take(params["speaker_emb"], data[:, :, 0], axis=0)      # (T, B, 4)
    da = jnp.take(params["da_emb"], data[:, :, 1], axis=0)           # (T, B, 20)
    lv = jnp.take(params["level_emb"], data[:, :, 2], axis=0)        # (T, B, 10)
    ul = data[:, :, 3][..., None].astype(jnp.float32)                # (T, B, 1)
    return jnp.concatenate([sp, da, lv, ul], axis=2)                 # (T, B, 35)


# ---------------------------------------------------------------------------
# References (correctness checking only)
# ---------------------------------------------------------------------------
def lstm_reference(params, data, hidden_state):
    """Full-f32 HIGHEST-precision PyTorch-semantics reference."""
    hi = jax.lax.Precision.HIGHEST
    x = _embed(params, data)
    h, c = hidden_state[0][0], hidden_state[1][0]
    H = h.shape[-1]
    w_ih, w_hh = params["w_ih"], params["w_hh"]
    b = params["b_ih"] + params["b_hh"]
    hs = []
    for t in range(x.shape[0]):
        g = (jnp.dot(x[t], w_ih.T, precision=hi)
             + jnp.dot(h, w_hh.T, precision=hi) + b)
        i = jax.nn.sigmoid(g[:, 0 * H:1 * H])
        f = jax.nn.sigmoid(g[:, 1 * H:2 * H])
        gg = jnp.tanh(g[:, 2 * H:3 * H])
        o = jax.nn.sigmoid(g[:, 3 * H:4 * H])
        c = f * c + i * gg
        h = o * jnp.tanh(c)
        hs.append(h)
    hseq = jnp.stack(hs, axis=0)
    dec = jnp.dot(hseq, params["w_dec"].T, precision=hi) + params["b_dec"]
    return dec, (h[None], c[None])


def lstm_matched_reference(packed, data, hidden_state, n_classes):
    """Pure-JAX reference with the SAME numerics as the kernel
    (bf16 MXU operands, f32 accumulation, gate math in f32)."""
    gx = _gx_from_packed(packed, data)                 # (T, B, 4H) f32
    h, c = hidden_state[0][0], hidden_state[1][0]
    H = h.shape[-1]
    whh = packed["whh_bf16"]
    hs = []
    for t in range(gx.shape[0]):
        g = gx[t] + jnp.dot(h.astype(jnp.bfloat16), whh,
                            preferred_element_type=jnp.float32)
        i = jax.nn.sigmoid(g[:, 0 * H:1 * H])
        f = jax.nn.sigmoid(g[:, 1 * H:2 * H])
        gg = jnp.tanh(g[:, 2 * H:3 * H])
        o = jax.nn.sigmoid(g[:, 3 * H:4 * H])
        c = f * c + i * gg
        h = o * jnp.tanh(c)
        hs.append(h)
    hseq = jnp.stack(hs, axis=0)
    dec = (jnp.dot(hseq.astype(jnp.bfloat16), packed["wdec_bf16"],
                   preferred_element_type=jnp.float32) + packed["bdec"])
    return dec[..., :n_classes], (h[None], c[None])


if __name__ == "__main__":
    key = jax.random.PRNGKey(0)
    pkey, dkey1, dkey2, dkey3, dkey4 = jax.random.split(key, 5)

    hidden_nodes = 64
    n_classes = 13
    params, input_dim = init_params(pkey, hidden_nodes=hidden_nodes, n_classes=n_classes)

    T, B = 8, 2  # seq_len, batch (PyTorch nn.LSTM default is seq-first)
    data = jnp.stack([
        jax.random.randint(dkey1, (T, B), 0, 2),    # speaker id   in [0, 2)
        jax.random.randint(dkey2, (T, B), 0, 13),   # dialogue act in [0, 13)
        jax.random.randint(dkey3, (T, B), 0, 4),    # level        in [0, 4)
        jax.random.randint(dkey4, (T, B), 1, 30),   # utterance length (int, used as float)
    ], axis=-1)                                     # (T, B, 4)

    h0 = jnp.zeros((1, B, hidden_nodes), jnp.float32)
    c0 = jnp.zeros((1, B, hidden_nodes), jnp.float32)

    lstm_forward, packed = make_lstm_forward(params)   # one-time packing + jit

    decoded, (h_n, c_n) = lstm_forward(data, (h0, c0))
    jax.block_until_ready((decoded, h_n, c_n))

    assert decoded.shape == (T, B, n_classes)
    assert h_n.shape == (1, B, hidden_nodes)
    assert c_n.shape == (1, B, hidden_nodes)

    # Tight check vs a reference with identical numerics (bf16 operands, f32 accumulate).
    m_dec, (m_h, m_c) = lstm_matched_reference(packed, data, (h0, c0), n_classes)
    err_matched = max(
        float(jnp.max(jnp.abs(decoded - m_dec))),
        float(jnp.max(jnp.abs(h_n - m_h))),
        float(jnp.max(jnp.abs(c_n - m_c))),
    )
    assert err_matched < 3e-3, f"kernel/matched-ref mismatch: max abs err = {err_matched}"

    # Loose check vs full-f32 HIGHEST reference (documents single-pass bf16 MXU operands).
    r_dec, (r_h, r_c) = lstm_reference(params, data, (h0, c0))
    err_full = max(
        float(jnp.max(jnp.abs(decoded - r_dec))),
        float(jnp.max(jnp.abs(h_n - r_h))),
        float(jnp.max(jnp.abs(c_n - r_c))),
    )
    assert err_full < 2e-1, f"kernel/f32-reference mismatch: max abs err = {err_full}"

    print("KERNEL_OK")
</pallas_src>

<mosaic_0001>
module attributes {stable_mosaic.version = 11 : i64} {
  func.func @_lstm_decoder_kernel(%arg0: memref<64x256xf32, #tpu.memory_space<vmem>>, %arg1: memref<8x64xf32, #tpu.memory_space<vmem>>, %arg2: memref<8x64xf32, #tpu.memory_space<vmem>>, %arg3: memref<64x256xbf16, #tpu.memory_space<vmem>>, %arg4: memref<64x128xbf16, #tpu.memory_space<vmem>>, %arg5: memref<1x128xf32, #tpu.memory_space<vmem>>, %arg6: memref<64x128xf32, #tpu.memory_space<vmem>>, %arg7: memref<8x64xf32, #tpu.memory_space<vmem>>, %arg8: memref<8x64xf32, #tpu.memory_space<vmem>>, %arg9: memref<64x64xf32, #tpu.memory_space<vmem>>) attributes {dimension_semantics = [], scalar_prefetch = 0 : i64, scratch_operands = 1 : i64, tpu.core_type = #tpu.core_type<tc>} {
    %c0 = arith.constant 0 : index
    %c0_0 = arith.constant 0 : index
    %0 = vector.load %arg1[%c0, %c0_0] : memref<8x64xf32, #tpu.memory_space<vmem>>, vector<8x64xf32>
    %c0_1 = arith.constant 0 : index
    %c0_2 = arith.constant 0 : index
    %1 = vector.load %arg2[%c0_1, %c0_2] : memref<8x64xf32, #tpu.memory_space<vmem>>, vector<8x64xf32>
    %c0_3 = arith.constant 0 : index
    %c0_4 = arith.constant 0 : index
    %2 = vector.load %arg0[%c0_3, %c0_4] : memref<64x256xf32, #tpu.memory_space<vmem>>, vector<8x256xf32>
    %3 = arith.truncf %0 : vector<8x64xf32> to vector<8x64xbf16>
    %c0_5 = arith.constant 0 : index
    %c0_6 = arith.constant 0 : index
    %4 = vector.load %arg3[%c0_5, %c0_6] : memref<64x256xbf16, #tpu.memory_space<vmem>>, vector<64x256xbf16>
    %cst = arith.constant dense<0.000000e+00> : vector<8x256xf32>
    %5 = tpu.matmul %3, %4, %cst {dimension_numbers = #tpu.dot_dimension_numbers<[1], [0], [0], [1], [0, 0, 1, 1], [], []>} : vector<8x64xbf16>, vector<64x256xbf16>, vector<8x256xf32> -> vector<8x256xf32>
    %6 = arith.addf %2, %5 : vector<8x256xf32>
    %7 = vector.extract_strided_slice %6 {offsets = [0, 0], sizes = [8, 64], strides = [1, 1]} : vector<8x256xf32> to vector<8x64xf32>
    %8 = arith.negf %7 : vector<8x64xf32>
    %9 = math.exp %8 : vector<8x64xf32>
    %cst_7 = arith.constant 1.000000e+00 : f32
    %10 = vector.broadcast %cst_7 : f32 to vector<8x64xf32>
    %11 = arith.addf %10, %9 : vector<8x64xf32>
    %12 = arith.divf %10, %11 : vector<8x64xf32>
    %13 = vector.extract_strided_slice %6 {offsets = [0, 64], sizes = [8, 64], strides = [1, 1]} : vector<8x256xf32> to vector<8x64xf32>
    %14 = arith.negf %13 : vector<8x64xf32>
    %15 = math.exp %14 : vector<8x64xf32>
    %cst_8 = arith.constant 1.000000e+00 : f32
    %16 = vector.broadcast %cst_8 : f32 to vector<8x64xf32>
    %17 = arith.addf %16, %15 : vector<8x64xf32>
    %18 = arith.divf %16, %17 : vector<8x64xf32>
    %19 = vector.extract_strided_slice %6 {offsets = [0, 128], sizes = [8, 64], strides = [1, 1]} : vector<8x256xf32> to vector<8x64xf32>
    %20 = math.tanh %19 : vector<8x64xf32>
    %21 = vector.extract_strided_slice %6 {offsets = [0, 192], sizes = [8, 64], strides = [1, 1]} : vector<8x256xf32> to vector<8x64xf32>
    %22 = arith.negf %21 : vector<8x64xf32>
    %23 = math.exp %22 : vector<8x64xf32>
    %cst_9 = arith.constant 1.000000e+00 : f32
    %24 = vector.broadcast %cst_9 : f32 to vector<8x64xf32>
    %25 = arith.addf %24, %23 : vector<8x64xf32>
    %26 = arith.divf %24, %25 : vector<8x64xf32>
    %27 = arith.mulf %18, %1 : vector<8x64xf32>
    %28 = arith.mulf %12, %20 : vector<8x64xf32>
    %29 = arith.addf %27, %28 : vector<8x64xf32>
    %30 = math.tanh %29 : vector<8x64xf32>
    %31 = arith.mulf %26, %30 : vector<8x64xf32>
    %c0_10 = arith.constant 0 : index
    %c0_11 = arith.constant 0 : index
    %32 = vector.load %arg9[%c0_10, %c0_11] : memref<64x64xf32, #tpu.memory_space<vmem>>, vector<8x64xf32>
    tpu.vector_store %arg9[%c0_10, %c0_11], %31 {strides = array<i32>} : memref<64x64xf32, #tpu.memory_space<vmem>>, vector<8x64xf32>,
    %c8 = arith.constant 8 : index
    %c0_12 = arith.constant 0 : index
    %33 = vector.load %arg0[%c8, %c0_12] : memref<64x256xf32, #tpu.memory_space<vmem>>, vector<8x256xf32>
    %34 = arith.truncf %31 : vector<8x64xf32> to vector<8x64xbf16>
    %c0_13 = arith.constant 0 : index
    %c0_14 = arith.constant 0 : index
    %35 = vector.load %arg3[%c0_13, %c0_14] : memref<64x256xbf16, #tpu.memory_space<vmem>>, vector<64x256xbf16>
    %cst_15 = arith.constant dense<0.000000e+00> : vector<8x256xf32>
    %36 = tpu.matmul %34, %35, %cst_15 {dimension_numbers = #tpu.dot_dimension_numbers<[1], [0], [0], [1], [0, 0, 1, 1], [], []>} : vector<8x64xbf16>, vector<64x256xbf16>, vector<8x256xf32> -> vector<8x256xf32>
    %37 = arith.addf %33, %36 : vector<8x256xf32>
    %38 = vector.extract_strided_slice %37 {offsets = [0, 0], sizes = [8, 64], strides = [1, 1]} : vector<8x256xf32> to vector<8x64xf32>
    %39 = arith.negf %38 : vector<8x64xf32>
    %40 = math.exp %39 : vector<8x64xf32>
    %cst_16 = arith.constant 1.000000e+00 : f32
    %41 = vector.broadcast %cst_16 : f32 to vector<8x64xf32>
    %42 = arith.addf %41, %40 : vector<8x64xf32>
    %43 = arith.divf %41, %42 : vector<8x64xf32>
    %44 = vector.extract_strided_slice %37 {offsets = [0, 64], sizes = [8, 64], strides = [1, 1]} : vector<8x256xf32> to vector<8x64xf32>
    %45 = arith.negf %44 : vector<8x64xf32>
    %46 = math.exp %45 : vector<8x64xf32>
    %cst_17 = arith.constant 1.000000e+00 : f32
    %47 = vector.broadcast %cst_17 : f32 to vector<8x64xf32>
    %48 = arith.addf %47, %46 : vector<8x64xf32>
    %49 = arith.divf %47, %48 : vector<8x64xf32>
    %50 = vector.extract_strided_slice %37 {offsets = [0, 128], sizes = [8, 64], strides = [1, 1]} : vector<8x256xf32> to vector<8x64xf32>
    %51 = math.tanh %50 : vector<8x64xf32>
    %52 = vector.extract_strided_slice %37 {offsets = [0, 192], sizes = [8, 64], strides = [1, 1]} : vector<8x256xf32> to vector<8x64xf32>
    %53 = arith.negf %52 : vector<8x64xf32>
    %54 = math.exp %53 : vector<8x64xf32>
    %cst_18 = arith.constant 1.000000e+00 : f32
    %55 = vector.broadcast %cst_18 : f32 to vector<8x64xf32>
    %56 = arith.addf %55, %54 : vector<8x64xf32>
    %57 = arith.divf %55, %56 : vector<8x64xf32>
    %58 = arith.mulf %49, %29 : vector<8x64xf32>
    %59 = arith.mulf %43, %51 : vector<8x64xf32>
    %60 = arith.addf %58, %59 : vector<8x64xf32>
    %61 = math.tanh %60 : vector<8x64xf32>
    %62 = arith.mulf %57, %61 : vector<8x64xf32>
    %c8_19 = arith.constant 8 : index
    %c0_20 = arith.constant 0 : index
    %63 = vector.load %arg9[%c8_19, %c0_20] : memref<64x64xf32, #tpu.memory_space<vmem>>, vector<8x64xf32>
    tpu.vector_store %arg9[%c8_19, %c0_20], %62 {strides = array<i32>} : memref<64x64xf32, #tpu.memory_space<vmem>>, vector<8x64xf32>,
    %c16 = arith.constant 16 : index
    %c0_21 = arith.constant 0 : index
    %64 = vector.load %arg0[%c16, %c0_21] : memref<64x256xf32, #tpu.memory_space<vmem>>, vector<8x256xf32>
    %65 = arith.truncf %62 : vector<8x64xf32> to vector<8x64xbf16>
    %c0_22 = arith.constant 0 : index
    %c0_23 = arith.constant 0 : index
    %66 = vector.load %arg3[%c0_22, %c0_23] : memref<64x256xbf16, #tpu.memory_space<vmem>>, vector<64x256xbf16>
    %cst_24 = arith.constant dense<0.000000e+00> : vector<8x256xf32>
    %67 = tpu.matmul %65, %66, %cst_24 {dimension_numbers = #tpu.dot_dimension_numbers<[1], [0], [0], [1], [0, 0, 1, 1], [], []>} : vector<8x64xbf16>, vector<64x256xbf16>, vector<8x256xf32> -> vector<8x256xf32>
    %68 = arith.addf %64, %67 : vector<8x256xf32>
    %69 = vector.extract_strided_slice %68 {offsets = [0, 0], sizes = [8, 64], strides = [1, 1]} : vector<8x256xf32> to vector<8x64xf32>
    %70 = arith.negf %69 : vector<8x64xf32>
    %71 = math.exp %70 : vector<8x64xf32>
    %cst_25 = arith.constant 1.000000e+00 : f32
    %72 = vector.broadcast %cst_25 : f32 to vector<8x64xf32>
    %73 = arith.addf %72, %71 : vector<8x64xf32>
    %74 = arith.divf %72, %73 : vector<8x64xf32>
    %75 = vector.extract_strided_slice %68 {offsets = [0, 64], sizes = [8, 64], strides = [1, 1]} : vector<8x256xf32> to vector<8x64xf32>
    %76 = arith.negf %75 : vector<8x64xf32>
    %77 = math.exp %76 : vector<8x64xf32>
    %cst_26 = arith.constant 1.000000e+00 : f32
    %78 = vector.broadcast %cst_26 : f32 to vector<8x64xf32>
    %79 = arith.addf %78, %77 : vector<8x64xf32>
    %80 = arith.divf %78, %79 : vector<8x64xf32>
    %81 = vector.extract_strided_slice %68 {offsets = [0, 128], sizes = [8, 64], strides = [1, 1]} : vector<8x256xf32> to vector<8x64xf32>
    %82 = math.tanh %81 : vector<8x64xf32>
    %83 = vector.extract_strided_slice %68 {offsets = [0, 192], sizes = [8, 64], strides = [1, 1]} : vector<8x256xf32> to vector<8x64xf32>
    %84 = arith.negf %83 : vector<8x64xf32>
    %85 = math.exp %84 : vector<8x64xf32>
    %cst_27 = arith.constant 1.000000e+00 : f32
    %86 = vector.broadcast %cst_27 : f32 to vector<8x64xf32>
    %87 = arith.addf %86, %85 : vector<8x64xf32>
    %88 = arith.divf %86, %87 : vector<8x64xf32>
    %89 = arith.mulf %80, %60 : vector<8x64xf32>
    %90 = arith.mulf %74, %82 : vector<8x64xf32>
    %91 = arith.addf %89, %90 : vector<8x64xf32>
    %92 = math.tanh %91 : vector<8x64xf32>
    %93 = arith.mulf %88, %92 : vector<8x64xf32>
    %c16_28 = arith.constant 16 : index
    %c0_29 = arith.constant 0 : index
    %94 = vector.load %arg9[%c16_28, %c0_29] : memref<64x64xf32, #tpu.memory_space<vmem>>, vector<8x64xf32>
    tpu.vector_store %arg9[%c16_28, %c0_29], %93 {strides = array<i32>} : memref<64x64xf32, #tpu.memory_space<vmem>>, vector<8x64xf32>,
    %c24 = arith.constant 24 : index
    %c0_30 = arith.constant 0 : index
    %95 = vector.load %arg0[%c24, %c0_30] : memref<64x256xf32, #tpu.memory_space<vmem>>, vector<8x256xf32>
    %96 = arith.truncf %93 : vector<8x64xf32> to vector<8x64xbf16>
    %c0_31 = arith.constant 0 : index
    %c0_32 = arith.constant 0 : index
    %97 = vector.load %arg3[%c0_31, %c0_32] : memref<64x256xbf16, #tpu.memory_space<vmem>>, vector<64x256xbf16>
    %cst_33 = arith.constant dense<0.000000e+00> : vector<8x256xf32>
    %98 = tpu.matmul %96, %97, %cst_33 {dimension_numbers = #tpu.dot_dimension_numbers<[1], [0], [0], [1], [0, 0, 1, 1], [], []>} : vector<8x64xbf16>, vector<64x256xbf16>, vector<8x256xf32> -> vector<8x256xf32>
    %99 = arith.addf %95, %98 : vector<8x256xf32>
    %100 = vector.extract_strided_slice %99 {offsets = [0, 0], sizes = [8, 64], strides = [1, 1]} : vector<8x256xf32> to vector<8x64xf32>
    %101 = arith.negf %100 : vector<8x64xf32>
    %102 = math.exp %101 : vector<8x64xf32>
    %cst_34 = arith.constant 1.000000e+00 : f32
    %103 = vector.broadcast %cst_34 : f32 to vector<8x64xf32>
    %104 = arith.addf %103, %102 : vector<8x64xf32>
    %105 = arith.divf %103, %104 : vector<8x64xf32>
    %106 = vector.extract_strided_slice %99 {offsets = [0, 64], sizes = [8, 64], strides = [1, 1]} : vector<8x256xf32> to vector<8x64xf32>
    %107 = arith.negf %106 : vector<8x64xf32>
    %108 = math.exp %107 : vector<8x64xf32>
    %cst_35 = arith.constant 1.000000e+00 : f32
    %109 = vector.broadcast %cst_35 : f32 to vector<8x64xf32>
    %110 = arith.addf %109, %108 : vector<8x64xf32>
    %111 = arith.divf %109, %110 : vector<8x64xf32>
    %112 = vector.extract_strided_slice %99 {offsets = [0, 128], sizes = [8, 64], strides = [1, 1]} : vector<8x256xf32> to vector<8x64xf32>
    %113 = math.tanh %112 : vector<8x64xf32>
    %114 = vector.extract_strided_slice %99 {offsets = [0, 192], sizes = [8, 64], strides = [1, 1]} : vector<8x256xf32> to vector<8x64xf32>
    %115 = arith.negf %114 : vector<8x64xf32>
    %116 = math.exp %115 : vector<8x64xf32>
    %cst_36 = arith.constant 1.000000e+00 : f32
    %117 = vector.broadcast %cst_36 : f32 to vector<8x64xf32>
    %118 = arith.addf %117, %116 : vector<8x64xf32>
    %119 = arith.divf %117, %118 : vector<8x64xf32>
    %120 = arith.mulf %111, %91 : vector<8x64xf32>
    %121 = arith.mulf %105, %113 : vector<8x64xf32>
    %122 = arith.addf %120, %121 : vector<8x64xf32>
    %123 = math.tanh %122 : vector<8x64xf32>
    %124 = arith.mulf %119, %123 : vector<8x64xf32>
    %c24_37 = arith.constant 24 : index
    %c0_38 = arith.constant 0 : index
    %125 = vector.load %arg9[%c24_37, %c0_38] : memref<64x64xf32, #tpu.memory_space<vmem>>, vector<8x64xf32>
    tpu.vector_store %arg9[%c24_37, %c0_38], %124 {strides = array<i32>} : memref<64x64xf32, #tpu.memory_space<vmem>>, vector<8x64xf32>,
    %c32 = arith.constant 32 : index
    %c0_39 = arith.constant 0 : index
    %126 = vector.load %arg0[%c32, %c0_39] : memref<64x256xf32, #tpu.memory_space<vmem>>, vector<8x256xf32>
    %127 = arith.truncf %124 : vector<8x64xf32> to vector<8x64xbf16>
    %c0_40 = arith.constant 0 : index
    %c0_41 = arith.constant 0 : index
    %128 = vector.load %arg3[%c0_40, %c0_41] : memref<64x256xbf16, #tpu.memory_space<vmem>>, vector<64x256xbf16>
    %cst_42 = arith.constant dense<0.000000e+00> : vector<8x256xf32>
    %129 = tpu.matmul %127, %128, %cst_42 {dimension_numbers = #tpu.dot_dimension_numbers<[1], [0], [0], [1], [0, 0, 1, 1], [], []>} : vector<8x64xbf16>, vector<64x256xbf16>, vector<8x256xf32> -> vector<8x256xf32>
    %130 = arith.addf %126, %129 : vector<8x256xf32>
    %131 = vector.extract_strided_slice %130 {offsets = [0, 0], sizes = [8, 64], strides = [1, 1]} : vector<8x256xf32> to vector<8x64xf32>
    %132 = arith.negf %131 : vector<8x64xf32>
    %133 = math.exp %132 : vector<8x64xf32>
    %cst_43 = arith.constant 1.000000e+00 : f32
    %134 = vector.broadcast %cst_43 : f32 to vector<8x64xf32>
    %135 = arith.addf %134, %133 : vector<8x64xf32>
    %136 = arith.divf %134, %135 : vector<8x64xf32>
    %137 = vector.extract_strided_slice %130 {offsets = [0, 64], sizes = [8, 64], strides = [1, 1]} : vector<8x256xf32> to vector<8x64xf32>
    %138 = arith.negf %137 : vector<8x64xf32>
    %139 = math.exp %138 : vector<8x64xf32>
    %cst_44 = arith.constant 1.000000e+00 : f32
    %140 = vector.broadcast %cst_44 : f32 to vector<8x64xf32>
    %141 = arith.addf %140, %139 : vector<8x64xf32>
    %142 = arith.divf %140, %141 : vector<8x64xf32>
    %143 = vector.extract_strided_slice %130 {offsets = [0, 128], sizes = [8, 64], strides = [1, 1]} : vector<8x256xf32> to vector<8x64xf32>
    %144 = math.tanh %143 : vector<8x64xf32>
    %145 = vector.extract_strided_slice %130 {offsets = [0, 192], sizes = [8, 64], strides = [1, 1]} : vector<8x256xf32> to vector<8x64xf32>
    %146 = arith.negf %145 : vector<8x64xf32>
    %147 = math.exp %146 : vector<8x64xf32>
    %cst_45 = arith.constant 1.000000e+00 : f32
    %148 = vector.broadcast %cst_45 : f32 to vector<8x64xf32>
    %149 = arith.addf %148, %147 : vector<8x64xf32>
    %150 = arith.divf %148, %149 : vector<8x64xf32>
    %151 = arith.mulf %142, %122 : vector<8x64xf32>
    %152 = arith.mulf %136, %144 : vector<8x64xf32>
    %153 = arith.addf %151, %152 : vector<8x64xf32>
    %154 = math.tanh %153 : vector<8x64xf32>
    %155 = arith.mulf %150, %154 : vector<8x64xf32>
    %c32_46 = arith.constant 32 : index
    %c0_47 = arith.constant 0 : index
    %156 = vector.load %arg9[%c32_46, %c0_47] : memref<64x64xf32, #tpu.memory_space<vmem>>, vector<8x64xf32>
    tpu.vector_store %arg9[%c32_46, %c0_47], %155 {strides = array<i32>} : memref<64x64xf32, #tpu.memory_space<vmem>>, vector<8x64xf32>,
    %c40 = arith.constant 40 : index
    %c0_48 = arith.constant 0 : index
    %157 = vector.load %arg0[%c40, %c0_48] : memref<64x256xf32, #tpu.memory_space<vmem>>, vector<8x256xf32>
    %158 = arith.truncf %155 : vector<8x64xf32> to vector<8x64xbf16>
    %c0_49 = arith.constant 0 : index
    %c0_50 = arith.constant 0 : index
    %159 = vector.load %arg3[%c0_49, %c0_50] : memref<64x256xbf16, #tpu.memory_space<vmem>>, vector<64x256xbf16>
    %cst_51 = arith.constant dense<0.000000e+00> : vector<8x256xf32>
    %160 = tpu.matmul %158, %159, %cst_51 {dimension_numbers = #tpu.dot_dimension_numbers<[1], [0], [0], [1], [0, 0, 1, 1], [], []>} : vector<8x64xbf16>, vector<64x256xbf16>, vector<8x256xf32> -> vector<8x256xf32>
    %161 = arith.addf %157, %160 : vector<8x256xf32>
    %162 = vector.extract_strided_slice %161 {offsets = [0, 0], sizes = [8, 64], strides = [1, 1]} : vector<8x256xf32> to vector<8x64xf32>
    %163 = arith.negf %162 : vector<8x64xf32>
    %164 = math.exp %163 : vector<8x64xf32>
    %cst_52 = arith.constant 1.000000e+00 : f32
    %165 = vector.broadcast %cst_52 : f32 to vector<8x64xf32>
    %166 = arith.addf %165, %164 : vector<8x64xf32>
    %167 = arith.divf %165, %166 : vector<8x64xf32>
    %168 = vector.extract_strided_slice %161 {offsets = [0, 64], sizes = [8, 64], strides = [1, 1]} : vector<8x256xf32> to vector<8x64xf32>
    %169 = arith.negf %168 : vector<8x64xf32>
    %170 = math.exp %169 : vector<8x64xf32>
    %cst_53 = arith.constant 1.000000e+00 : f32
    %171 = vector.broadcast %cst_53 : f32 to vector<8x64xf32>
    %172 = arith.addf %171, %170 : vector<8x64xf32>
    %173 = arith.divf %171, %172 : vector<8x64xf32>
    %174 = vector.extract_strided_slice %161 {offsets = [0, 128], sizes = [8, 64], strides = [1, 1]} : vector<8x256xf32> to vector<8x64xf32>
    %175 = math.tanh %174 : vector<8x64xf32>
    %176 = vector.extract_strided_slice %161 {offsets = [0, 192], sizes = [8, 64], strides = [1, 1]} : vector<8x256xf32> to vector<8x64xf32>
    %177 = arith.negf %176 : vector<8x64xf32>
    %178 = math.exp %177 : vector<8x64xf32>
    %cst_54 = arith.constant 1.000000e+00 : f32
    %179 = vector.broadcast %cst_54 : f32 to vector<8x64xf32>
    %180 = arith.addf %179, %178 : vector<8x64xf32>
    %181 = arith.divf %179, %180 : vector<8x64xf32>
    %182 = arith.mulf %173, %153 : vector<8x64xf32>
    %183 = arith.mulf %167, %175 : vector<8x64xf32>
    %184 = arith.addf %182, %183 : vector<8x64xf32>
    %185 = math.tanh %184 : vector<8x64xf32>
    %186 = arith.mulf %181, %185 : vector<8x64xf32>
    %c40_55 = arith.constant 40 : index
    %c0_56 = arith.constant 0 : index
    %187 = vector.load %arg9[%c40_55, %c0_56] : memref<64x64xf32, #tpu.memory_space<vmem>>, vector<8x64xf32>
    tpu.vector_store %arg9[%c40_55, %c0_56], %186 {strides = array<i32>} : memref<64x64xf32, #tpu.memory_space<vmem>>, vector<8x64xf32>,
    %c48 = arith.constant 48 : index
    %c0_57 = arith.constant 0 : index
    %188 = vector.load %arg0[%c48, %c0_57] : memref<64x256xf32, #tpu.memory_space<vmem>>, vector<8x256xf32>
    %189 = arith.truncf %186 : vector<8x64xf32> to vector<8x64xbf16>
    %c0_58 = arith.constant 0 : index
    %c0_59 = arith.constant 0 : index
    %190 = vector.load %arg3[%c0_58, %c0_59] : memref<64x256xbf16, #tpu.memory_space<vmem>>, vector<64x256xbf16>
    %cst_60 = arith.constant dense<0.000000e+00> : vector<8x256xf32>
    %191 = tpu.matmul %189, %190, %cst_60 {dimension_numbers = #tpu.dot_dimension_numbers<[1], [0], [0], [1], [0, 0, 1, 1], [], []>} : vector<8x64xbf16>, vector<64x256xbf16>, vector<8x256xf32> -> vector<8x256xf32>
    %192 = arith.addf %188, %191 : vector<8x256xf32>
    %193 = vector.extract_strided_slice %192 {offsets = [0, 0], sizes = [8, 64], strides = [1, 1]} : vector<8x256xf32> to vector<8x64xf32>
    %194 = arith.negf %193 : vector<8x64xf32>
    %195 = math.exp %194 : vector<8x64xf32>
    %cst_61 = arith.constant 1.000000e+00 : f32
    %196 = vector.broadcast %cst_61 : f32 to vector<8x64xf32>
    %197 = arith.addf %196, %195 : vector<8x64xf32>
    %198 = arith.divf %196, %197 : vector<8x64xf32>
    %199 = vector.extract_strided_slice %192 {offsets = [0, 64], sizes = [8, 64], strides = [1, 1]} : vector<8x256xf32> to vector<8x64xf32>
    %200 = arith.negf %199 : vector<8x64xf32>
    %201 = math.exp %200 : vector<8x64xf32>
    %cst_62 = arith.constant 1.000000e+00 : f32
    %202 = vector.broadcast %cst_62 : f32 to vector<8x64xf32>
    %203 = arith.addf %202, %201 : vector<8x64xf32>
    %204 = arith.divf %202, %203 : vector<8x64xf32>
    %205 = vector.extract_strided_slice %192 {offsets = [0, 128], sizes = [8, 64], strides = [1, 1]} : vector<8x256xf32> to vector<8x64xf32>
    %206 = math.tanh %205 : vector<8x64xf32>
    %207 = vector.extract_strided_slice %192 {offsets = [0, 192], sizes = [8, 64], strides = [1, 1]} : vector<8x256xf32> to vector<8x64xf32>
    %208 = arith.negf %207 : vector<8x64xf32>
    %209 = math.exp %208 : vector<8x64xf32>
    %cst_63 = arith.constant 1.000000e+00 : f32
    %210 = vector.broadcast %cst_63 : f32 to vector<8x64xf32>
    %211 = arith.addf %210, %209 : vector<8x64xf32>
    %212 = arith.divf %210, %211 : vector<8x64xf32>
    %213 = arith.mulf %204, %184 : vector<8x64xf32>
    %214 = arith.mulf %198, %206 : vector<8x64xf32>
    %215 = arith.addf %213, %214 : vector<8x64xf32>
    %216 = math.tanh %215 : vector<8x64xf32>
    %217 = arith.mulf %212, %216 : vector<8x64xf32>
    %c48_64 = arith.constant 48 : index
    %c0_65 = arith.constant 0 : index
    %218 = vector.load %arg9[%c48_64, %c0_65] : memref<64x64xf32, #tpu.memory_space<vmem>>, vector<8x64xf32>
    tpu.vector_store %arg9[%c48_64, %c0_65], %217 {strides = array<i32>} : memref<64x64xf32, #tpu.memory_space<vmem>>, vector<8x64xf32>,
    %c56 = arith.constant 56 : index
    %c0_66 = arith.constant 0 : index
    %219 = vector.load %arg0[%c56, %c0_66] : memref<64x256xf32, #tpu.memory_space<vmem>>, vector<8x256xf32>
    %220 = arith.truncf %217 : vector<8x64xf32> to vector<8x64xbf16>
    %c0_67 = arith.constant 0 : index
    %c0_68 = arith.constant 0 : index
    %221 = vector.load %arg3[%c0_67, %c0_68] : memref<64x256xbf16, #tpu.memory_space<vmem>>, vector<64x256xbf16>
    %cst_69 = arith.constant dense<0.000000e+00> : vector<8x256xf32>
    %222 = tpu.matmul %220, %221, %cst_69 {dimension_numbers = #tpu.dot_dimension_numbers<[1], [0], [0], [1], [0, 0, 1, 1], [], []>} : vector<8x64xbf16>, vector<64x256xbf16>, vector<8x256xf32> -> vector<8x256xf32>
    %223 = arith.addf %219, %222 : vector<8x256xf32>
    %224 = vector.extract_strided_slice %223 {offsets = [0, 0], sizes = [8, 64], strides = [1, 1]} : vector<8x256xf32> to vector<8x64xf32>
    %225 = arith.negf %224 : vector<8x64xf32>
    %226 = math.exp %225 : vector<8x64xf32>
    %cst_70 = arith.constant 1.000000e+00 : f32
    %227 = vector.broadcast %cst_70 : f32 to vector<8x64xf32>
    %228 = arith.addf %227, %226 : vector<8x64xf32>
    %229 = arith.divf %227, %228 : vector<8x64xf32>
    %230 = vector.extract_strided_slice %223 {offsets = [0, 64], sizes = [8, 64], strides = [1, 1]} : vector<8x256xf32> to vector<8x64xf32>
    %231 = arith.negf %230 : vector<8x64xf32>
    %232 = math.exp %231 : vector<8x64xf32>
    %cst_71 = arith.constant 1.000000e+00 : f32
    %233 = vector.broadcast %cst_71 : f32 to vector<8x64xf32>
    %234 = arith.addf %233, %232 : vector<8x64xf32>
    %235 = arith.divf %233, %234 : vector<8x64xf32>
    %236 = vector.extract_strided_slice %223 {offsets = [0, 128], sizes = [8, 64], strides = [1, 1]} : vector<8x256xf32> to vector<8x64xf32>
    %237 = math.tanh %236 : vector<8x64xf32>
    %238 = vector.extract_strided_slice %223 {offsets = [0, 192], sizes = [8, 64], strides = [1, 1]} : vector<8x256xf32> to vector<8x64xf32>
    %239 = arith.negf %238 : vector<8x64xf32>
    %240 = math.exp %239 : vector<8x64xf32>
    %cst_72 = arith.constant 1.000000e+00 : f32
    %241 = vector.broadcast %cst_72 : f32 to vector<8x64xf32>
    %242 = arith.addf %241, %240 : vector<8x64xf32>
    %243 = arith.divf %241, %242 : vector<8x64xf32>
    %244 = arith.mulf %235, %215 : vector<8x64xf32>
    %245 = arith.mulf %229, %237 : vector<8x64xf32>
    %246 = arith.addf %244, %245 : vector<8x64xf32>
    %247 = math.tanh %246 : vector<8x64xf32>
    %248 = arith.mulf %243, %247 : vector<8x64xf32>
    %c56_73 = arith.constant 56 : index
    %c0_74 = arith.constant 0 : index
    %249 = vector.load %arg9[%c56_73, %c0_74] : memref<64x64xf32, #tpu.memory_space<vmem>>, vector<8x64xf32>
    tpu.vector_store %arg9[%c56_73, %c0_74], %248 {strides = array<i32>} : memref<64x64xf32, #tpu.memory_space<vmem>>, vector<8x64xf32>,
    %c0_75 = arith.constant 0 : index
    %c0_76 = arith.constant 0 : index
    %250 = vector.load %arg7[%c0_75, %c0_76] : memref<8x64xf32, #tpu.memory_space<vmem>>, vector<8x64xf32>
    tpu.vector_store %arg7[%c0_75, %c0_76], %248 {strides = array<i32>} : memref<8x64xf32, #tpu.memory_space<vmem>>, vector<8x64xf32>,
    %c0_77 = arith.constant 0 : index
    %c0_78 = arith.constant 0 : index
    %251 = vector.load %arg8[%c0_77, %c0_78] : memref<8x64xf32, #tpu.memory_space<vmem>>, vector<8x64xf32>
    tpu.vector_store %arg8[%c0_77, %c0_78], %246 {strides = array<i32>} : memref<8x64xf32, #tpu.memory_space<vmem>>, vector<8x64xf32>,
    %c0_79 = arith.constant 0 : index
    %c0_80 = arith.constant 0 : index
    %252 = vector.load %arg9[%c0_79, %c0_80] : memref<64x64xf32, #tpu.memory_space<vmem>>, vector<64x64xf32>
    %253 = arith.truncf %252 : vector<64x64xf32> to vector<64x64xbf16>
    %c0_81 = arith.constant 0 : index
    %c0_82 = arith.constant 0 : index
    %254 = vector.load %arg4[%c0_81, %c0_82] : memref<64x128xbf16, #tpu.memory_space<vmem>>, vector<64x128xbf16>
    %cst_83 = arith.constant dense<0.000000e+00> : vector<64x128xf32>
    %255 = tpu.matmul %253, %254, %cst_83 {dimension_numbers = #tpu.dot_dimension_numbers<[1], [0], [0], [1], [0, 0, 1, 1], [], []>} : vector<64x64xbf16>, vector<64x128xbf16>, vector<64x128xf32> -> vector<64x128xf32>
    %c0_84 = arith.constant 0 : index
    %c0_85 = arith.constant 0 : index
    %256 = vector.load %arg5[%c0_84, %c0_85] : memref<1x128xf32, #tpu.memory_space<vmem>>, vector<1x128xf32>
    %257 = vector.broadcast %256 : vector<1x128xf32> to vector<64x128xf32>
    %258 = arith.addf %255, %257 : vector<64x128xf32>
    %c0_86 = arith.constant 0 : index
    %c0_87 = arith.constant 0 : index
    %259 = vector.load %arg6[%c0_86, %c0_87] : memref<64x128xf32, #tpu.memory_space<vmem>>, vector<64x128xf32>
    tpu.vector_store %arg6[%c0_86, %c0_87], %258 {strides = array<i32>} : memref<64x128xf32, #tpu.memory_space<vmem>>, vector<64x128xf32>,
    return
  }
}

</mosaic_0001>

<bundles_post_ra>
// kernel: forward.1
= control target key start
LH: loop header
LB: loop body
LE: loop exit
PB: predicated region body
PF: predicated region fallthrough
CT: control target
= control target key end

     0   :  { %s1724_s19 = smov 64   ;;  %vm80_vm0 = vcmask 523264   ;;  %s2382_s3 = inlined_call_operand.vmem [shape: bf16[64,256], index: 3, kind: input, shape index: {}]   ;;  %s2383_s2 = inlined_call_operand.vmem [shape: f32[8,64], index: 2, kind: input, shape index: {}]   ;;  %s2384_s1 = inlined_call_operand.vmem [shape: f32[8,64], index: 1, kind: input, shape index: {}]   ;;  %s2385_s0 = inlined_call_operand.vmem [shape: f32[64,256], index: 0, kind: input, shape index: {}]   ;;  %s2386_s4 = inlined_call_operand.vmem [shape: bf16[64,128], index: 4, kind: input, shape index: {}]   ;;  %s2387_s5 = inlined_call_operand.vmem [shape: f32[1,128], index: 5, kind: input, shape index: {}]   ;;  %s2388_s6 = inlined_call_operand.vmem [shape: f32[64,128], index: 6, kind: output, shape index: {0}]   ;;  %s2389_s7 = inlined_call_operand.vmem [shape: f32[8,64], index: 7, kind: output, shape index: {1}]   ;;  %s2390_s8 = inlined_call_operand.vmem [shape: f32[8,64], index: 8, kind: output, shape index: {2}]  }
   0x1   :  { %v1276_v0 = vld [vmem:[%s2382_s3 + $0x30] sm:$0xf]  ;;  %v1565_v1 = vld [vmem:[%s2382_s3 + $0x34] sm:$0xf0]  ;;  %v1268_v2 = vld [vmem:[%s2382_s3 + $0x20] sm:$0xf] }
   0x2   :  { %v1277_v3 = vor.u32 %v1565_v1, %v1276_v0  ;;  %v1563_v4 = vld [vmem:[%s2382_s3 + $0x24] sm:$0xf0]  ;;  %v1260_v6 = vld [vmem:[%s2382_s3 + $0x10] sm:$0xf]  ;;  %v1561_v7 = vld [vmem:[%s2382_s3 + $0x14] sm:$0xf0] }
   0x3   :  { %v1269_v5 = vor.u32 %v1563_v4, %v1268_v2  ;;  %v28_v8 = vld [vmem:[%s2383_s2] sm:$0xff]  ;;  %v1261_v9 = vor.u32 %v1561_v7, %v1260_v6  ;;  %v1559_v11 = vld [vmem:[%s2382_s3 + $0x4] sm:$0xf0]  ;;  %v1564_v12 = vld [vmem:[%s2382_s3 + $0x34] sm:$0xf] }
   0x4   :  { %88 = vmatpush.bf16.msra.mxu1 %v1277_v3  ;;  %152 = vrot.lane.b32.xlu0 %v28_v8, %s1724_s19  ;;  %v1252_v10 = vld [vmem:[%s2382_s3] sm:$0xf]  ;;  %v1278_v13 = vld [vmem:[%s2382_s3 + $0x38] sm:$0xf0]  ;;  %v1562_v17 = vld [vmem:[%s2382_s3 + $0x24] sm:$0xf] }
   0x5   :  { %v1253_v14 = vor.u32 %v1559_v11, %v1252_v10  ;;  %v27_v15 = vld [vmem:[%s2384_s1] sm:$0xff]  ;;  %v1281_v16 = vor.u32 %v1564_v12, %v1278_v13  ;;  %v1270_v18 = vld [vmem:[%s2382_s3 + $0x28] sm:$0xf0]  ;;  %v1560_v21 = vld [vmem:[%s2382_s3 + $0x14] sm:$0xf] }
   0x6   :  { %v31_v19 = vpack.c.bf16 %v27_v15, %v27_v15  ;;  %v1273_v20 = vor.u32 %v1562_v17, %v1270_v18  ;;  %v1262_v22 = vld [vmem:[%s2382_s3 + $0x18] sm:$0xf0]  ;;  %v1558_v24 = vld [vmem:[%s2382_s3 + $0x4] sm:$0xf]  ;;  %v1254_v25 = vld [vmem:[%s2382_s3 + $0x8] sm:$0xf0] }
   0x7   :  { %v1265_v23 = vor.u32 %v1560_v21, %v1262_v22  ;;  %v1257_v26 = vor.u32 %v1558_v24, %v1254_v25  ;;  %v29_v27 = vld [vmem:[%s2385_s0] sm:$0xff]  ;;  %v30_v35 = vld [vmem:[%s2385_s0 + $0x8] sm:$0xff]  ;;  %v1312_v53 = vld [vmem:[%s2382_s3 + $0x30] sm:$0xf] }
   0x8   :  { %89 = vmatpush.bf16.msra.mxu1 %v1269_v5  ;;  %v1573_v54 = vld [vmem:[%s2382_s3 + $0x34] sm:$0xf0]  ;;  %v1572_v55 = vld [vmem:[%s2382_s3 + $0x34] sm:$0xf]  ;;  %v1314_v57 = vld [vmem:[%s2382_s3 + $0x38] sm:$0xf0] }
   0x9   :  { %v1313_v56 = vor.u32 %v1573_v54, %v1312_v53  ;;  %v1304_v58 = vld [vmem:[%s2382_s3 + $0x20] sm:$0xf]  ;;  %v1571_v59 = vld [vmem:[%s2382_s3 + $0x24] sm:$0xf0]  ;;  %v1317_v60 = vor.u32 %v1572_v55, %v1314_v57  ;;  %v1570_v61 = vld [vmem:[%s2382_s3 + $0x24] sm:$0xf] }
   0xa   :  { %v1306_v62 = vld [vmem:[%s2382_s3 + $0x28] sm:$0xf0]  ;;  %v1305_v63 = vor.u32 %v1571_v59, %v1304_v58  ;;  %v1296_v1 = vld [vmem:[%s2382_s3 + $0x10] sm:$0xf]  ;;  %v1569_v2 = vld [vmem:[%s2382_s3 + $0x14] sm:$0xf0] }
   0xb   :  { %230 = vmatpush.bf16.msra.mxu2 %v1313_v56  ;;  %243 = vmatpush.bf16.msra.mxu3 %v1317_v60  ;;  %v1309_v0 = vor.u32 %v1570_v61, %v1306_v62  ;;  %v1568_v4 = vld [vmem:[%s2382_s3 + $0x14] sm:$0xf]  ;;  %v1298_v5 = vld [vmem:[%s2382_s3 + $0x18] sm:$0xf0]  ;;  %v1297_v6 = vor.u32 %v1569_v2, %v1296_v1  ;;  %v1567_v10 = vld [vmem:[%s2382_s3 + $0x4] sm:$0xf0] }
   0xc   :  { %90 = vmatpush.bf16.msra.mxu1 %v1261_v9  ;;  %v1301_v8 = vor.u32 %v1568_v4, %v1298_v5  ;;  %v1288_v9 = vld [vmem:[%s2382_s3] sm:$0xf]  ;;  %v1566_v11 = vld [vmem:[%s2382_s3 + $0x4] sm:$0xf]  ;;  %v1290_v12 = vld [vmem:[%s2382_s3 + $0x8] sm:$0xf0] }
   0xd   :  { %v1348_v57 = vld [vmem:[%s2382_s3 + $0x30] sm:$0xf]  ;;  %v1581_v58 = vld [vmem:[%s2382_s3 + $0x34] sm:$0xf0]  ;;  %v1580_v59 = vld [vmem:[%s2382_s3 + $0x34] sm:$0xf] }
   0xe   :  { %v1349_v60 = vor.u32 %v1581_v58, %v1348_v57  ;;  %v1350_v61 = vld [vmem:[%s2382_s3 + $0x38] sm:$0xf0]  ;;  %v1340_v62 = vld [vmem:[%s2382_s3 + $0x20] sm:$0xf]  ;;  %v1578_v1 = vld [vmem:[%s2382_s3 + $0x24] sm:$0xf] }
   0xf   :  { %231 = vmatpush.bf16.msra.mxu2 %v1305_v63  ;;  %244 = vmatpush.bf16.msra.mxu3 %v1309_v0  ;;  %v1579_v63 = vld [vmem:[%s2382_s3 + $0x24] sm:$0xf0]  ;;  %v1353_v0 = vor.u32 %v1580_v59, %v1350_v61  ;;  %v1342_v2 = vld [vmem:[%s2382_s3 + $0x28] sm:$0xf0]  ;;  %v1332_v5 = vld [vmem:[%s2382_s3 + $0x10] sm:$0xf] }
  0x10   :  { %91 = vmatpush.bf16.msra.mxu1 %v1253_v14  ;;  %v1289_v14 = vor.u32 %v1567_v10, %v1288_v9  ;;  %v1345_v4 = vor.u32 %v1578_v1, %v1342_v2  ;;  %v1334_v9 = vld [vmem:[%s2382_s3 + $0x18] sm:$0xf0]  ;;  %v1384_v61 = vld [vmem:[%s2382_s3 + $0x30] sm:$0xf]  ;;  %v1376_v2 = vld [vmem:[%s2382_s3 + $0x20] sm:$0xf] }
  0x11   :  { %v1386_v1 = vld [vmem:[%s2382_s3 + $0x38] sm:$0xf0] }
  0x13   :  { %1282 = vmatmul.msk.bf16.vlgmr.msra.gmra.mxu1 %vm80_vm0, %v31_v19  ;;  %232 = vmatpush.bf16.msra.mxu2 %v1297_v6  ;;  %v1577_v6 = vld [vmem:[%s2382_s3 + $0x14] sm:$0xf0] }
  0x14   :  { %101 = vmatpush.bf16.msrb.mxu1 %v1281_v16  ;;  %245 = vmatpush.bf16.msra.mxu3 %v1301_v8  ;;  %v1293_v16 = vor.u32 %v1566_v11, %v1290_v12  ;;  %v1576_v8 = vld [vmem:[%s2382_s3 + $0x14] sm:$0xf]  ;;  %v1333_v10 = vor.u32 %v1577_v6, %v1332_v5  ;;  %v1586_v5 = vld [vmem:[%s2382_s3 + $0x24] sm:$0xf]  ;;  %v1378_v6 = vld [vmem:[%s2382_s3 + $0x28] sm:$0xf0] }
  0x15   :  { %v1337_v12 = vor.u32 %v1576_v8, %v1334_v9  ;;  %v1381_v8 = vor.u32 %v1586_v5, %v1378_v6  ;;  %v1368_v9 = vld [vmem:[%s2382_s3 + $0x10] sm:$0xf]  ;;  %v1422_v6 = vld [vmem:[%s2382_s3 + $0x38] sm:$0xf0] }
  0x17   :  { %233 = vmatpush.bf16.msra.mxu2 %v1289_v14  ;;  %v1575_v14 = vld [vmem:[%s2382_s3 + $0x4] sm:$0xf0] }
  0x18   :  { %102 = vmatpush.bf16.msrb.mxu1 %v1273_v20  ;;  %246 = vmatpush.bf16.msra.mxu3 %v1293_v16  ;;  %v1326_v16 = vld [vmem:[%s2382_s3 + $0x8] sm:$0xf0] }
  0x1b   :  { %368 = vmatpush.bf16.msrb.mxu2 %v1349_v60 }
  0x1c   :  { %103 = vmatpush.bf16.msrb.mxu1 %v1265_v23 }
  0x20   :  { %104 = vmatpush.bf16.msrb.mxu1 %v1257_v26 }
  0x23   :  { %1283 = vmatmul.msk.bf16.vlgmr.msrb.gmra.mxu1 %vm80_vm0, %v31_v19 }
  0x24   :  { %381 = vmatpush.bf16.msra.mxu1 %v1353_v0 }
  0x28   :  { %382 = vmatpush.bf16.msra.mxu1 %v1345_v4 }
  0x2c   :  { %383 = vmatpush.bf16.msra.mxu1 %v1337_v12  ;;  %v1584_v12 = vld [vmem:[%s2382_s3 + $0x14] sm:$0xf] }
  0x76   :  { %v153_v13 = vpop.permute.xlu0 %152 }
  0x90   :  { %v93_v28 = vpop.f32.mrf.mxu1 }
  0x91   :  { %v110_v29 = vadd.f32 %v93_v28, %v29_v27 }
  0x93   :  { %v1284_v30 = vmul.f32 -1.442695, %v110_v29 }
  0x95   :  { %1628 = vpow2.f32 %v1284_v30 }
  0x98   :  { %v95_v31 = vpop.f32.mrf.mxu1 }
  0x99   :  { %v169_v31 = vld [vmem:[%s2385_s0 + $0x10] sm:$0xff] }
  0x9b   :  { %v1629_v32 = vpop.eup %1628 }
  0x9c   :  { %v115_v33 = vadd.f32 1.0, %v1629_v32 }
  0x9e   :  { %1630 = vrcp.f32 %v115_v33  ;;  %v127_v41 = vand.u32 2147483648, %v115_v33  ;;  %v125_v43 = vand.u32 2147483647, %v115_v33  ;;  %vm121_vm2 = vweird.f32 %v115_v33 }
  0xa0   :  { %v106_v34 = vpop.f32.mrf.mxu1  ;;  %v128_v46 = vor.u32 1.1754944e-38, %v127_v41  ;;  %vm126_vm4 = vcmp.eq.f32.partialorder %v125_v43, 8.507059e+37 }
  0xa1   :  { %v111_v37 = vadd.f32 %v106_v34, %v30_v35 }
  0xa3   :  { %1632 = vtanh.f32 %v111_v37  ;;  %v1285_v50 = vmul.f32 -1.442695, %v111_v37 }
  0xa4   :  { %v1631_v36 = vpop.eup %1630 }
  0xa5   :  { %v117_v38 = vmul.f32 %v1631_v36, %v115_v33  ;;  %vm122_vm1 = vweird.f32 %v1631_v36  ;;  %1634 = vpow2.f32 %v1285_v50 }
  0xa6   :  { %vm123_vm3 = vmor %vm121_vm2, %vm122_vm1 }
  0xa7   :  { %v118_v39 = vsub.f32 1.0, %v117_v38 }
  0xa8   :  { %v108_v40 = vpop.f32.mrf.mxu1 }
  0xa9   :  { %v119_v42 = vmul.f32 %v1631_v36, %v118_v39  ;;  %v1633_v45 = vpop.eup %1632  ;;  %v170_v40 = vld [vmem:[%s2385_s0 + $0x18] sm:$0xff] }
  0xab   :  { %v120_v44 = vadd.f32 %v1631_v36, %v119_v42  ;;  %v1635_v51 = vpop.eup %1634 }
  0xac   :  { %v135_v52 = vadd.f32 1.0, %v1635_v51 }
  0xad   :  { %v124_v47 = vsel %vm123_vm3, %v1631_v36, %v120_v44 }
  0xae   :  { %v129_v48 = vsel %vm126_vm4, %v128_v46, %v124_v47  ;;  %1636 = vrcp.f32 %v135_v52  ;;  %v147_v22 = vand.u32 2147483648, %v135_v52  ;;  %vm141_vm6 = vweird.f32 %v135_v52 }
  0xaf   :  { %v156_v49 = vmul.f32 %v1633_v45, %v129_v48  ;;  %v155_v18 = vmul.f32 %v153_v13, %v129_v48  ;;  %v145_v23 = vand.u32 2147483647, %v135_v52  ;;  %v1324_v13 = vld [vmem:[%s2382_s3] sm:$0xf] }
  0xb0   :  { %v148_v25 = vor.u32 1.1754944e-38, %v147_v22 }
  0xb1   :  { %158 = vrot.lane.b32.xlu0 %v156_v49, %s1724_s19  ;;  %vm146_vm8 = vcmp.eq.f32.partialorder %v145_v23, 8.507059e+37 }
  0xb4   :  { %v1637_v3 = vpop.eup %1636 }
  0xb5   :  { %v137_v7 = vmul.f32 %v1637_v3, %v135_v52  ;;  %vm142_vm5 = vweird.f32 %v1637_v3 }
  0xb6   :  { %vm143_vm7 = vmor %vm141_vm6, %vm142_vm5 }
  0xb7   :  { %v138_v15 = vsub.f32 1.0, %v137_v7 }
  0xb9   :  { %v139_v17 = vmul.f32 %v1637_v3, %v138_v15  ;;  %v1574_v15 = vld [vmem:[%s2382_s3 + $0x4] sm:$0xf] }
  0xbb   :  { %v140_v21 = vadd.f32 %v1637_v3, %v139_v17  ;;  %v1325_v17 = vor.u32 %v1575_v14, %v1324_v13  ;;  %v1370_v13 = vld [vmem:[%s2382_s3 + $0x18] sm:$0xf0] }
  0xbd   :  { %v144_v24 = vsel %vm143_vm7, %v1637_v3, %v140_v21  ;;  %v1341_v3 = vor.u32 %v1579_v63, %v1340_v62  ;;  %v1589_v62 = vld [vmem:[%s2382_s3 + $0x34] sm:$0xf0]  ;;  %v1588_v63 = vld [vmem:[%s2382_s3 + $0x34] sm:$0xf] }
  0xbe   :  { %v149_v27 = vsel %vm146_vm8, %v148_v25, %v144_v24  ;;  %v1385_v0 = vor.u32 %v1589_v62, %v1384_v61  ;;  %v1389_v4 = vor.u32 %v1588_v63, %v1386_v1 }
  0xbf   :  { %369 = vmatpush.bf16.msrb.mxu2 %v1341_v3  ;;  %v1587_v3 = vld [vmem:[%s2382_s3 + $0x24] sm:$0xf0] }
  0xc0   :  { %519 = vmatpush.bf16.msrb.mxu3 %v1389_v4  ;;  %v1596_v4 = vld [vmem:[%s2382_s3 + $0x34] sm:$0xf] }
  0xc3   :  { %370 = vmatpush.bf16.msrb.mxu2 %v1333_v10  ;;  %v1585_v10 = vld [vmem:[%s2382_s3 + $0x14] sm:$0xf0] }
  0xc4   :  { %v1369_v14 = vor.u32 %v1585_v10, %v1368_v9  ;;  %520 = vmatpush.bf16.msrb.mxu3 %v1381_v8  ;;  %v1595_v8 = vld [vmem:[%s2382_s3 + $0x24] sm:$0xf0]  ;;  %v1425_v9 = vor.u32 %v1596_v4, %v1422_v6  ;;  %v1594_v10 = vld [vmem:[%s2382_s3 + $0x24] sm:$0xf] }
  0xc7   :  { %371 = vmatpush.bf16.msrb.mxu2 %v1325_v17  ;;  %v1360_v17 = vld [vmem:[%s2382_s3] sm:$0xf] }
 0x123   :  { %v159_v19 = vpop.permute.xlu0 %158 }
 0x124   :  { %v1882_v20 = vadd.f32 %v159_v19, %v155_v18  ;;  %v1329_v19 = vor.u32 %v1574_v15, %v1326_v16  ;;  %v1373_v16 = vor.u32 %v1584_v12, %v1370_v13 }
 0x126   :  { %1638 = vtanh.f32 %v1882_v20  ;;  %384 = vmatpush.bf16.msra.mxu1 %v1329_v19  ;;  %v1582_v19 = vld [vmem:[%s2382_s3 + $0x4] sm:$0xf]  ;;  %521 = vmatpush.bf16.msrb.mxu3 %v1373_v16 }
 0x12a   :  { %657 = vmatpush.bf16.msrb.mxu1 %v1425_v9  ;;  %v1605_v9 = vld [vmem:[%s2382_s3 + $0x34] sm:$0xf0] }
 0x12c   :  { %v1639_v26 = vpop.eup %1638 }
 0x12d   :  { %v1885_v28 = vmul.f32 %v1639_v26, %v149_v27 }
 0x12f   :  { %v171_v29 = vpack.c.bf16 %v1885_v28, %v1885_v28 }
 0x131   :  { %181 = vrot.lane.b32.xlu1 %v171_v29, %s1724_s19 }
 0x1a3   :  { %v182_v30 = vpop.permute.xlu1 %181 }
 0x1a4   :  { %1318 = vmatmul.msk.bf16.vlgmr.msra.gmra.mxu2 %vm80_vm0, %v182_v30  ;;  %1319 = vmatmul.msk.bf16.vlgmr.msra.gmra.mxu3 %vm80_vm0, %v182_v30 }
 0x1a5   :  { %506 = vmatpush.bf16.msra.mxu2 %v1385_v0 }
 0x227   :  { %v235_v32 = vpop.f32.mrf.mxu2  ;;  %v248_v33 = vpop.f32.mrf.mxu3 }
 0x228   :  { %v252_v34 = vadd.f32 %v235_v32, %v169_v31  ;;  %v253_v42 = vadd.f32 %v248_v33, %v170_v40 }
 0x22a   :  { %v1320_v35 = vmul.f32 -1.442695, %v252_v34  ;;  %v1321_v54 = vmul.f32 -1.442695, %v253_v42 }
 0x22c   :  { %1640 = vpow2.f32 %v1320_v35 }
 0x22f   :  { %v237_v36 = vpop.f32.mrf.mxu2  ;;  %v250_v37 = vpop.f32.mrf.mxu3 }
 0x230   :  { %v307_v36 = vld [vmem:[%s2385_s0 + $0x20] sm:$0xff] }
 0x232   :  { %v1641_v38 = vpop.eup %1640 }
 0x233   :  { %v257_v39 = vadd.f32 1.0, %v1641_v38 }
 0x235   :  { %1642 = vrcp.f32 %v257_v39  ;;  %v269_v45 = vand.u32 2147483648, %v257_v39  ;;  %v267_v47 = vand.u32 2147483647, %v257_v39  ;;  %vm263_vm10 = vweird.f32 %v257_v39 }
 0x236   :  { %1644 = vtanh.f32 %v253_v42 }
 0x237   :  { %v270_v49 = vor.u32 1.1754944e-38, %v269_v45  ;;  %vm268_vm12 = vcmp.eq.f32.partialorder %v267_v47, 8.507059e+37  ;;  %1646 = vpow2.f32 %v1321_v54 }
 0x23b   :  { %v1643_v41 = vpop.eup %1642 }
 0x23c   :  { %v259_v43 = vmul.f32 %v1643_v41, %v257_v39  ;;  %vm264_vm9 = vweird.f32 %v1643_v41  ;;  %v1645_v51 = vpop.eup %1644 }
 0x23d   :  { %vm265_vm11 = vmor %vm263_vm10, %vm264_vm9  ;;  %v1647_v55 = vpop.eup %1646 }
 0x23e   :  { %v260_v44 = vsub.f32 1.0, %v259_v43  ;;  %v277_v56 = vadd.f32 1.0, %v1647_v55 }
 0x240   :  { %v261_v46 = vmul.f32 %v1643_v41, %v260_v44  ;;  %1648 = vrcp.f32 %v277_v56  ;;  %v289_v26 = vand.u32 2147483648, %v277_v56  ;;  %vm283_vm14 = vweird.f32 %v277_v56  ;;  %v308_v44 = vld [vmem:[%s2385_s0 + $0x28] sm:$0xff] }
 0x241   :  { %v287_v27 = vand.u32 2147483647, %v277_v56 }
 0x242   :  { %v262_v48 = vadd.f32 %v1643_v41, %v261_v46  ;;  %v290_v30 = vor.u32 1.1754944e-38, %v289_v26 }
 0x243   :  { %vm288_vm1 = vcmp.eq.f32.partialorder %v287_v27, 8.507059e+37 }
 0x244   :  { %v266_v50 = vsel %vm265_vm11, %v1643_v41, %v262_v48 }
 0x245   :  { %v271_v52 = vsel %vm268_vm12, %v270_v49, %v266_v50 }
 0x246   :  { %v294_v53 = vmul.f32 %v1645_v51, %v271_v52  ;;  %v1649_v7 = vpop.eup %1648  ;;  %v293_v22 = vmul.f32 %v271_v52, %v1882_v20 }
 0x247   :  { %v279_v11 = vmul.f32 %v1649_v7, %v277_v56  ;;  %vm284_vm13 = vweird.f32 %v1649_v7 }
 0x248   :  { %296 = vrot.lane.b32.xlu1 %v294_v53, %s1724_s19  ;;  %vm285_vm15 = vmor %vm283_vm14, %vm284_vm13 }
 0x249   :  { %v280_v18 = vsub.f32 1.0, %v279_v11 }
 0x24b   :  { %v281_v21 = vmul.f32 %v1649_v7, %v280_v18  ;;  %v1583_v18 = vld [vmem:[%s2382_s3 + $0x4] sm:$0xf0] }
 0x24d   :  { %v282_v25 = vadd.f32 %v1649_v7, %v281_v21  ;;  %v1362_v21 = vld [vmem:[%s2382_s3 + $0x8] sm:$0xf0] }
 0x24f   :  { %v286_v29 = vsel %vm285_vm15, %v1649_v7, %v282_v25  ;;  %v1377_v7 = vor.u32 %v1587_v3, %v1376_v2  ;;  %v1365_v25 = vor.u32 %v1582_v19, %v1362_v21  ;;  %v1420_v2 = vld [vmem:[%s2382_s3 + $0x30] sm:$0xf]  ;;  %v1597_v3 = vld [vmem:[%s2382_s3 + $0x34] sm:$0xf0] }
 0x250   :  { %v291_v32 = vsel %vm288_vm1, %v290_v30, %v286_v29  ;;  %v1421_v5 = vor.u32 %v1597_v3, %v1420_v2 }
 0x251   :  { %507 = vmatpush.bf16.msra.mxu2 %v1377_v7  ;;  %522 = vmatpush.bf16.msrb.mxu3 %v1365_v25  ;;  %v1412_v7 = vld [vmem:[%s2382_s3 + $0x20] sm:$0xf]  ;;  %v1591_v25 = vld [vmem:[%s2382_s3 + $0x4] sm:$0xf0] }
 0x252   :  { %v1413_v12 = vor.u32 %v1595_v8, %v1412_v7  ;;  %v1456_v8 = vld [vmem:[%s2382_s3 + $0x30] sm:$0xf] }
 0x255   :  { %508 = vmatpush.bf16.msra.mxu2 %v1369_v14  ;;  %644 = vmatpush.bf16.msra.mxu3 %v1421_v5  ;;  %v1404_v14 = vld [vmem:[%s2382_s3 + $0x10] sm:$0xf] }
 0x259   :  { %645 = vmatpush.bf16.msra.mxu3 %v1413_v12  ;;  %v1458_v12 = vld [vmem:[%s2382_s3 + $0x38] sm:$0xf0] }
 0x2ba   :  { %v297_v23 = vpop.permute.xlu1 %296 }
 0x2bb   :  { %v1948_v24 = vadd.f32 %v297_v23, %v293_v22  ;;  %v1361_v22 = vor.u32 %v1583_v18, %v1360_v17  ;;  %v1592_v17 = vld [vmem:[%s2382_s3 + $0x14] sm:$0xf]  ;;  %v1406_v18 = vld [vmem:[%s2382_s3 + $0x18] sm:$0xf0] }
 0x2bd   :  { %1650 = vtanh.f32 %v1948_v24  ;;  %509 = vmatpush.bf16.msra.mxu2 %v1361_v22  ;;  %v1409_v22 = vor.u32 %v1592_v17, %v1406_v18  ;;  %v1450_v17 = vld [vmem:[%s2382_s3 + $0x28] sm:$0xf0] }
 0x2c3   :  { %v1651_v31 = vpop.eup %1650 }
 0x2c4   :  { %v1951_v33 = vmul.f32 %v1651_v31, %v291_v32 }
 0x2c6   :  { %v309_v20 = vpack.c.bf16 %v1951_v33, %v1951_v33 }
 0x2c8   :  { %319 = vrot.lane.b32.xlu2 %v309_v20, %s1724_s19 }
 0x322   :  { %v320_v34 = vpop.permute.xlu2 %319 }
 0x323   :  { %1354 = vmatmul.msk.bf16.vlgmr.msrb.gmra.mxu2 %vm80_vm0, %v320_v34  ;;  %1355 = vmatmul.msk.bf16.vlgmr.msra.gmra.mxu1 %vm80_vm0, %v320_v34 }
 0x3a0   :  { %v386_v35 = vpop.f32.mrf.mxu1 }
 0x3a1   :  { %v391_v46 = vadd.f32 %v386_v35, %v308_v44 }
 0x3a3   :  { %v1357_v58 = vmul.f32 -1.442695, %v391_v46 }
 0x3a6   :  { %v373_v37 = vpop.f32.mrf.mxu2 }
 0x3a7   :  { %v390_v38 = vadd.f32 %v373_v37, %v307_v36 }
 0x3a8   :  { %v388_v39 = vpop.f32.mrf.mxu1 }
 0x3a9   :  { %v1356_v40 = vmul.f32 -1.442695, %v390_v38 }
 0x3ab   :  { %1652 = vpow2.f32 %v1356_v40  ;;  %v445_v40 = vld [vmem:[%s2385_s0 + $0x30] sm:$0xff] }
 0x3ae   :  { %v375_v41 = vpop.f32.mrf.mxu2 }
 0x3b1   :  { %v1653_v42 = vpop.eup %1652 }
 0x3b2   :  { %v395_v43 = vadd.f32 1.0, %v1653_v42 }
 0x3b4   :  { %1654 = vrcp.f32 %v395_v43  ;;  %v407_v49 = vand.u32 2147483648, %v395_v43  ;;  %v405_v51 = vand.u32 2147483647, %v395_v43  ;;  %vm401_vm3 = vweird.f32 %v395_v43 }
 0x3b5   :  { %1656 = vtanh.f32 %v391_v46 }
 0x3b6   :  { %v408_v53 = vor.u32 1.1754944e-38, %v407_v49  ;;  %vm406_vm5 = vcmp.eq.f32.partialorder %v405_v51, 8.507059e+37  ;;  %1658 = vpow2.f32 %v1357_v58  ;;  %v446_v49 = vld [vmem:[%s2385_s0 + $0x38] sm:$0xff] }
 0x3ba   :  { %v1655_v45 = vpop.eup %1654 }
 0x3bb   :  { %v397_v47 = vmul.f32 %v1655_v45, %v395_v43  ;;  %vm402_vm2 = vweird.f32 %v1655_v45  ;;  %v1657_v55 = vpop.eup %1656 }
 0x3bc   :  { %vm403_vm4 = vmor %vm401_vm3, %vm402_vm2  ;;  %v1659_v59 = vpop.eup %1658 }
 0x3bd   :  { %v398_v48 = vsub.f32 1.0, %v397_v47  ;;  %v415_v60 = vadd.f32 1.0, %v1659_v59 }
 0x3bf   :  { %v399_v50 = vmul.f32 %v1655_v45, %v398_v48  ;;  %1660 = vrcp.f32 %v415_v60  ;;  %v427_v32 = vand.u32 2147483648, %v415_v60  ;;  %vm421_vm7 = vweird.f32 %v415_v60 }
 0x3c0   :  { %v425_v20 = vand.u32 2147483647, %v415_v60 }
 0x3c1   :  { %v400_v52 = vadd.f32 %v1655_v45, %v399_v50  ;;  %v428_v35 = vor.u32 1.1754944e-38, %v427_v32 }
 0x3c2   :  { %vm426_vm9 = vcmp.eq.f32.partialorder %v425_v20, 8.507059e+37 }
 0x3c3   :  { %v404_v54 = vsel %vm403_vm4, %v1655_v45, %v400_v52 }
 0x3c4   :  { %v409_v56 = vsel %vm406_vm5, %v408_v53, %v404_v54 }
 0x3c5   :  { %v432_v57 = vmul.f32 %v1657_v55, %v409_v56  ;;  %v1661_v11 = vpop.eup %1660  ;;  %v431_v27 = vmul.f32 %v409_v56, %v1948_v24 }
 0x3c6   :  { %v417_v15 = vmul.f32 %v1661_v11, %v415_v60  ;;  %vm422_vm6 = vweird.f32 %v1661_v11 }
 0x3c7   :  { %434 = vrot.lane.b32.xlu2 %v432_v57, %s1724_s19  ;;  %vm423_vm8 = vmor %vm421_vm7, %vm422_vm6 }
 0x3c8   :  { %v418_v23 = vsub.f32 1.0, %v417_v15  ;;  %v1593_v15 = vld [vmem:[%s2382_s3 + $0x14] sm:$0xf0] }
 0x3c9   :  { %v1405_v19 = vor.u32 %v1593_v15, %v1404_v14  ;;  %v1603_v14 = vld [vmem:[%s2382_s3 + $0x24] sm:$0xf0] }
 0x3ca   :  { %v419_v26 = vmul.f32 %v1661_v11, %v418_v23  ;;  %v1396_v23 = vld [vmem:[%s2382_s3] sm:$0xf] }
 0x3cb   :  { %646 = vmatpush.bf16.msra.mxu3 %v1405_v19 }
 0x3cc   :  { %v420_v31 = vadd.f32 %v1661_v11, %v419_v26  ;;  %v1590_v26 = vld [vmem:[%s2382_s3 + $0x4] sm:$0xf] }
 0x3ce   :  { %v424_v34 = vsel %vm423_vm8, %v1661_v11, %v420_v31  ;;  %v1414_v11 = vld [vmem:[%s2382_s3 + $0x28] sm:$0xf0] }
 0x3cf   :  { %v429_v37 = vsel %vm426_vm9, %v428_v35, %v424_v34  ;;  %v1417_v13 = vor.u32 %v1594_v10, %v1414_v11  ;;  %v1604_v10 = vld [vmem:[%s2382_s3 + $0x34] sm:$0xf]  ;;  %v1457_v11 = vor.u32 %v1605_v9, %v1456_v8 }
 0x3d0   :  { %v1461_v15 = vor.u32 %v1604_v10, %v1458_v12 }
 0x3d1   :  { %658 = vmatpush.bf16.msrb.mxu1 %v1417_v13  ;;  %v1448_v13 = vld [vmem:[%s2382_s3 + $0x20] sm:$0xf]  ;;  %782 = vmatpush.bf16.msrb.mxu2 %v1457_v11 }
 0x3d2   :  { %v1449_v18 = vor.u32 %v1603_v14, %v1448_v13 }
 0x3d5   :  { %659 = vmatpush.bf16.msrb.mxu1 %v1409_v22  ;;  %v1601_v22 = vld [vmem:[%s2382_s3 + $0x14] sm:$0xf0]  ;;  %783 = vmatpush.bf16.msrb.mxu2 %v1449_v18 }
 0x421   :  { %v435_v29 = vpop.permute.xlu2 %434 }
 0x422   :  { %v2014_v30 = vadd.f32 %v435_v29, %v431_v27  ;;  %v1398_v27 = vld [vmem:[%s2382_s3 + $0x8] sm:$0xf0]  ;;  %v1397_v29 = vor.u32 %v1591_v25, %v1396_v23  ;;  %v1600_v25 = vld [vmem:[%s2382_s3 + $0x14] sm:$0xf] }
 0x423   :  { %v1401_v32 = vor.u32 %v1590_v26, %v1398_v27  ;;  %v1442_v26 = vld [vmem:[%s2382_s3 + $0x18] sm:$0xf0] }
 0x424   :  { %1662 = vtanh.f32 %v2014_v30  ;;  %647 = vmatpush.bf16.msra.mxu3 %v1397_v29 }
 0x425   :  { %660 = vmatpush.bf16.msrb.mxu1 %v1401_v32  ;;  %v1432_v32 = vld [vmem:[%s2382_s3] sm:$0xf] }
 0x42a   :  { %v1663_v36 = vpop.eup %1662 }
 0x42b   :  { %v2017_v38 = vmul.f32 %v1663_v36, %v429_v37 }
 0x42d   :  { %v447_v24 = vpack.c.bf16 %v2017_v38, %v2017_v38 }
 0x42f   :  { %457 = vrot.lane.b32.xlu0 %v447_v24, %s1724_s19 }
 0x4a1   :  { %v458_v39 = vpop.permute.xlu0 %457 }
 0x4a2   :  { %1390 = vmatmul.msk.bf16.vlgmr.msra.gmra.mxu2 %vm80_vm0, %v458_v39  ;;  %1391 = vmatmul.msk.bf16.vlgmr.msrb.gmra.mxu3 %vm80_vm0, %v458_v39 }
 0x4a3   :  { %795 = vmatpush.bf16.msrb.mxu3 %v1461_v15  ;;  %v1492_v15 = vld [vmem:[%s2382_s3 + $0x30] sm:$0xf] }
 0x525   :  { %v511_v41 = vpop.f32.mrf.mxu2  ;;  %v524_v42 = vpop.f32.mrf.mxu3 }
 0x526   :  { %v528_v43 = vadd.f32 %v511_v41, %v445_v40  ;;  %v529_v51 = vadd.f32 %v524_v42, %v446_v49 }
 0x528   :  { %v1392_v44 = vmul.f32 -1.442695, %v528_v43  ;;  %v1393_v63 = vmul.f32 -1.442695, %v529_v51 }
 0x52a   :  { %1664 = vpow2.f32 %v1392_v44 }
 0x52d   :  { %v513_v45 = vpop.f32.mrf.mxu2  ;;  %v526_v46 = vpop.f32.mrf.mxu3 }
 0x530   :  { %v1665_v47 = vpop.eup %1664 }
 0x531   :  { %v533_v48 = vadd.f32 1.0, %v1665_v47  ;;  %v583_v47 = vld [vmem:[%s2385_s0 + $0x40] sm:$0xff] }
 0x533   :  { %1666 = vrcp.f32 %v533_v48  ;;  %v545_v54 = vand.u32 2147483648, %v533_v48  ;;  %v543_v56 = vand.u32 2147483647, %v533_v48  ;;  %vm539_vm11 = vweird.f32 %v533_v48 }
 0x534   :  { %1668 = vtanh.f32 %v529_v51 }
 0x535   :  { %v546_v58 = vor.u32 1.1754944e-38, %v545_v54  ;;  %vm544_vm13 = vcmp.eq.f32.partialorder %v543_v56, 8.507059e+37  ;;  %1670 = vpow2.f32 %v1393_v63 }
 0x539   :  { %v1667_v50 = vpop.eup %1666 }
 0x53a   :  { %v535_v52 = vmul.f32 %v1667_v50, %v533_v48  ;;  %vm540_vm10 = vweird.f32 %v1667_v50  ;;  %v1669_v60 = vpop.eup %1668 }
 0x53b   :  { %vm541_vm12 = vmor %vm539_vm11, %vm540_vm10  ;;  %v1671_v0 = vpop.eup %1670 }
 0x53c   :  { %v536_v53 = vsub.f32 1.0, %v535_v52  ;;  %v553_v1 = vadd.f32 1.0, %v1671_v0 }
 0x53e   :  { %v537_v55 = vmul.f32 %v1667_v50, %v536_v53  ;;  %1672 = vrcp.f32 %v553_v1  ;;  %v565_v24 = vand.u32 2147483648, %v553_v1  ;;  %vm559_vm15 = vweird.f32 %v553_v1 }
 0x53f   :  { %v563_v39 = vand.u32 2147483647, %v553_v1 }
 0x540   :  { %v538_v57 = vadd.f32 %v1667_v50, %v537_v55  ;;  %v566_v41 = vor.u32 1.1754944e-38, %v565_v24  ;;  %v584_v55 = vld [vmem:[%s2385_s0 + $0x48] sm:$0xff] }
 0x541   :  { %vm564_vm2 = vcmp.eq.f32.partialorder %v563_v39, 8.507059e+37 }
 0x542   :  { %v542_v59 = vsel %vm541_vm12, %v1667_v50, %v538_v57 }
 0x543   :  { %v547_v61 = vsel %vm544_vm13, %v546_v58, %v542_v59 }
 0x544   :  { %v570_v62 = vmul.f32 %v1669_v60, %v547_v61  ;;  %v1673_v16 = vpop.eup %1672  ;;  %v569_v34 = vmul.f32 %v547_v61, %v2014_v30 }
 0x545   :  { %v555_v21 = vmul.f32 %v1673_v16, %v553_v1  ;;  %vm560_vm14 = vweird.f32 %v1673_v16 }
 0x546   :  { %572 = vrot.lane.b32.xlu1 %v570_v62, %s1724_s19  ;;  %vm561_vm1 = vmor %vm559_vm15, %vm560_vm14 }
 0x547   :  { %v556_v31 = vsub.f32 1.0, %v555_v21  ;;  %v1440_v21 = vld [vmem:[%s2382_s3 + $0x10] sm:$0xf] }
 0x548   :  { %v1441_v27 = vor.u32 %v1601_v22, %v1440_v21  ;;  %v1484_v21 = vld [vmem:[%s2382_s3 + $0x20] sm:$0xf]  ;;  %v1611_v22 = vld [vmem:[%s2382_s3 + $0x24] sm:$0xf0] }
 0x549   :  { %v557_v20 = vmul.f32 %v1673_v16, %v556_v31  ;;  %v1445_v31 = vor.u32 %v1600_v25, %v1442_v26  ;;  %v1610_v25 = vld [vmem:[%s2382_s3 + $0x24] sm:$0xf]  ;;  %v1486_v26 = vld [vmem:[%s2382_s3 + $0x28] sm:$0xf0] }
 0x54a   :  { %784 = vmatpush.bf16.msrb.mxu2 %v1441_v27  ;;  %v1485_v27 = vor.u32 %v1611_v22, %v1484_v21 }
 0x54b   :  { %v558_v37 = vadd.f32 %v1673_v16, %v557_v20  ;;  %v1599_v20 = vld [vmem:[%s2382_s3 + $0x4] sm:$0xf0] }
 0x54d   :  { %v562_v40 = vsel %vm561_vm1, %v1673_v16, %v558_v37  ;;  %v1602_v16 = vld [vmem:[%s2382_s3 + $0x24] sm:$0xf]  ;;  %v1433_v37 = vor.u32 %v1599_v20, %v1432_v32  ;;  %v1609_v32 = vld [vmem:[%s2382_s3 + $0x14] sm:$0xf0] }
 0x54e   :  { %v567_v43 = vsel %vm564_vm2, %v566_v41, %v562_v40  ;;  %v1453_v19 = vor.u32 %v1602_v16, %v1450_v17  ;;  %v1613_v16 = vld [vmem:[%s2382_s3 + $0x34] sm:$0xf0]  ;;  %v1612_v17 = vld [vmem:[%s2382_s3 + $0x34] sm:$0xf] }
 0x54f   :  { %785 = vmatpush.bf16.msrb.mxu2 %v1433_v37  ;;  %v1493_v18 = vor.u32 %v1613_v16, %v1492_v15 }
 0x550   :  { %796 = vmatpush.bf16.msrb.mxu3 %v1453_v19  ;;  %v1494_v19 = vld [vmem:[%s2382_s3 + $0x38] sm:$0xf0] }
 0x551   :  { %920 = vmatpush.bf16.msra.mxu0 %v1493_v18 }
 0x554   :  { %797 = vmatpush.bf16.msrb.mxu3 %v1445_v31  ;;  %v1476_v31 = vld [vmem:[%s2382_s3 + $0x10] sm:$0xf] }
 0x555   :  { %921 = vmatpush.bf16.msra.mxu0 %v1485_v27  ;;  %v1477_v37 = vor.u32 %v1609_v32, %v1476_v31  ;;  %v1528_v31 = vld [vmem:[%s2382_s3 + $0x30] sm:$0xf] }
 0x559   :  { %922 = vmatpush.bf16.msra.mxu0 %v1477_v37  ;;  %v1619_v37 = vld [vmem:[%s2382_s3 + $0x24] sm:$0xf0] }
 0x5b8   :  { %v573_v35 = vpop.permute.xlu1 %572 }
 0x5b9   :  { %v2080_v36 = vadd.f32 %v573_v35, %v569_v34  ;;  %v1598_v34 = vld [vmem:[%s2382_s3 + $0x4] sm:$0xf]  ;;  %v1434_v35 = vld [vmem:[%s2382_s3 + $0x8] sm:$0xf0] }
 0x5ba   :  { %v1437_v39 = vor.u32 %v1598_v34, %v1434_v35  ;;  %v1608_v34 = vld [vmem:[%s2382_s3 + $0x14] sm:$0xf]  ;;  %v1478_v35 = vld [vmem:[%s2382_s3 + $0x18] sm:$0xf0] }
 0x5bb   :  { %1674 = vtanh.f32 %v2080_v36 }
 0x5bc   :  { %798 = vmatpush.bf16.msrb.mxu3 %v1437_v39  ;;  %v1481_v39 = vor.u32 %v1608_v34, %v1478_v35  ;;  %v1530_v34 = vld [vmem:[%s2382_s3 + $0x38] sm:$0xf0]  ;;  %v1520_v35 = vld [vmem:[%s2382_s3 + $0x20] sm:$0xf] }
 0x5c1   :  { %v1675_v42 = vpop.eup %1674 }
 0x5c2   :  { %v2083_v44 = vmul.f32 %v1675_v42, %v567_v43 }
 0x5c4   :  { %v585_v30 = vpack.c.bf16 %v2083_v44, %v2083_v44 }
 0x5c6   :  { %595 = vrot.lane.b32.xlu2 %v585_v30, %s1724_s19 }
 0x620   :  { %v596_v45 = vpop.permute.xlu2 %595 }
 0x621   :  { %1426 = vmatmul.msk.bf16.vlgmr.msra.gmra.mxu3 %vm80_vm0, %v596_v45  ;;  %1427 = vmatmul.msk.bf16.vlgmr.msrb.gmra.mxu1 %vm80_vm0, %v596_v45 }
 0x69e   :  { %v662_v46 = vpop.f32.mrf.mxu1 }
 0x69f   :  { %v667_v57 = vadd.f32 %v662_v46, %v584_v55 }
 0x6a1   :  { %v1429_v5 = vmul.f32 -1.442695, %v667_v57 }
 0x6a4   :  { %v649_v48 = vpop.f32.mrf.mxu3 }
 0x6a5   :  { %v666_v49 = vadd.f32 %v649_v48, %v583_v47 }
 0x6a6   :  { %v664_v50 = vpop.f32.mrf.mxu1 }
 0x6a7   :  { %v1428_v51 = vmul.f32 -1.442695, %v666_v49 }
 0x6a9   :  { %1676 = vpow2.f32 %v1428_v51 }
 0x6ac   :  { %v651_v52 = vpop.f32.mrf.mxu3 }
 0x6af   :  { %v1677_v53 = vpop.eup %1676 }
 0x6b0   :  { %v671_v54 = vadd.f32 1.0, %v1677_v53  ;;  %v721_v53 = vld [vmem:[%s2385_s0 + $0x50] sm:$0xff] }
 0x6b2   :  { %1678 = vrcp.f32 %v671_v54  ;;  %v683_v60 = vand.u32 2147483648, %v671_v54  ;;  %v681_v62 = vand.u32 2147483647, %v671_v54  ;;  %vm677_vm4 = vweird.f32 %v671_v54 }
 0x6b3   :  { %1680 = vtanh.f32 %v667_v57 }
 0x6b4   :  { %v684_v0 = vor.u32 1.1754944e-38, %v683_v60  ;;  %vm682_vm6 = vcmp.eq.f32.partialorder %v681_v62, 8.507059e+37  ;;  %1682 = vpow2.f32 %v1429_v5  ;;  %v722_v62 = vld [vmem:[%s2385_s0 + $0x58] sm:$0xff] }
 0x6b8   :  { %v1679_v56 = vpop.eup %1678 }
 0x6b9   :  { %v673_v58 = vmul.f32 %v1679_v56, %v671_v54  ;;  %vm678_vm3 = vweird.f32 %v1679_v56  ;;  %v1681_v2 = vpop.eup %1680 }
 0x6ba   :  { %vm679_vm5 = vmor %vm677_vm4, %vm678_vm3  ;;  %v1683_v6 = vpop.eup %1682 }
 0x6bb   :  { %v674_v59 = vsub.f32 1.0, %v673_v58  ;;  %v691_v7 = vadd.f32 1.0, %v1683_v6 }
 0x6bd   :  { %v675_v61 = vmul.f32 %v1679_v56, %v674_v59  ;;  %1684 = vrcp.f32 %v691_v7  ;;  %v703_v45 = vand.u32 2147483648, %v691_v7  ;;  %vm697_vm8 = vweird.f32 %v691_v7 }
 0x6be   :  { %v701_v46 = vand.u32 2147483647, %v691_v7 }
 0x6bf   :  { %v676_v63 = vadd.f32 %v1679_v56, %v675_v61  ;;  %v704_v48 = vor.u32 1.1754944e-38, %v703_v45 }
 0x6c0   :  { %vm702_vm10 = vcmp.eq.f32.partialorder %v701_v46, 8.507059e+37 }
 0x6c1   :  { %v680_v1 = vsel %vm679_vm5, %v1679_v56, %v676_v63 }
 0x6c2   :  { %v685_v3 = vsel %vm682_vm6, %v684_v0, %v680_v1 }
 0x6c3   :  { %v708_v4 = vmul.f32 %v1681_v2, %v685_v3  ;;  %v1685_v23 = vpop.eup %1684  ;;  %v707_v41 = vmul.f32 %v685_v3, %v2080_v36 }
 0x6c4   :  { %v693_v29 = vmul.f32 %v1685_v23, %v691_v7  ;;  %vm698_vm7 = vweird.f32 %v1685_v23 }
 0x6c5   :  { %710 = vrot.lane.b32.xlu0 %v708_v4, %s1724_s19  ;;  %vm699_vm9 = vmor %vm697_vm8, %vm698_vm7 }
 0x6c6   :  { %v694_v24 = vsub.f32 1.0, %v693_v29  ;;  %v1489_v29 = vor.u32 %v1610_v25, %v1486_v26 }
 0x6c8   :  { %v695_v40 = vmul.f32 %v1685_v23, %v694_v24 }
 0x6ca   :  { %v696_v30 = vadd.f32 %v1685_v23, %v695_v40  ;;  %v1468_v40 = vld [vmem:[%s2382_s3] sm:$0xf] }
 0x6cc   :  { %v700_v47 = vsel %vm699_vm9, %v1685_v23, %v696_v30  ;;  %v1497_v23 = vor.u32 %v1612_v17, %v1494_v19  ;;  %v1470_v30 = vld [vmem:[%s2382_s3 + $0x8] sm:$0xf0] }
 0x6cd   :  { %v705_v50 = vsel %vm702_vm10, %v704_v48, %v700_v47 }
 0x6ce   :  { %933 = vmatpush.bf16.msra.mxu1 %v1497_v23 }
 0x6d2   :  { %934 = vmatpush.bf16.msra.mxu1 %v1489_v29 }
 0x6d6   :  { %935 = vmatpush.bf16.msra.mxu1 %v1481_v39 }
 0x737   :  { %v711_v42 = vpop.permute.xlu0 %710 }
 0x738   :  { %v2146_v43 = vadd.f32 %v711_v42, %v707_v41  ;;  %v1607_v41 = vld [vmem:[%s2382_s3 + $0x4] sm:$0xf0]  ;;  %v1606_v42 = vld [vmem:[%s2382_s3 + $0x4] sm:$0xf] }
 0x739   :  { %v1469_v45 = vor.u32 %v1607_v41, %v1468_v40  ;;  %v1473_v47 = vor.u32 %v1606_v42, %v1470_v30  ;;  %v1618_v40 = vld [vmem:[%s2382_s3 + $0x24] sm:$0xf]  ;;  %v1522_v41 = vld [vmem:[%s2382_s3 + $0x28] sm:$0xf0]  ;;  %v1521_v30 = vor.u32 %v1619_v37, %v1520_v35 }
 0x73a   :  { %1686 = vtanh.f32 %v2146_v43 }
 0x73b   :  { %923 = vmatpush.bf16.msra.mxu0 %v1469_v45  ;;  %936 = vmatpush.bf16.msra.mxu1 %v1473_v47  ;;  %v1512_v47 = vld [vmem:[%s2382_s3 + $0x10] sm:$0xf] }
 0x740   :  { %v1687_v49 = vpop.eup %1686 }
 0x741   :  { %v2149_v51 = vmul.f32 %v1687_v49, %v705_v50 }
 0x743   :  { %v723_v36 = vpack.c.bf16 %v2149_v51, %v2149_v51 }
 0x745   :  { %733 = vrot.lane.b32.xlu1 %v723_v36, %s1724_s19 }
 0x7b7   :  { %v734_v52 = vpop.permute.xlu1 %733 }
 0x7b8   :  { %1462 = vmatmul.msk.bf16.vlgmr.msrb.gmra.mxu2 %vm80_vm0, %v734_v52  ;;  %1463 = vmatmul.msk.bf16.vlgmr.msrb.gmra.mxu3 %vm80_vm0, %v734_v52 }
 0x83b   :  { %v787_v54 = vpop.f32.mrf.mxu2  ;;  %v800_v55 = vpop.f32.mrf.mxu3 }
 0x83c   :  { %v804_v56 = vadd.f32 %v787_v54, %v721_v53  ;;  %v805_v0 = vadd.f32 %v800_v55, %v722_v62 }
 0x83e   :  { %v1464_v57 = vmul.f32 -1.442695, %v804_v56  ;;  %v1465_v12 = vmul.f32 -1.442695, %v805_v0 }
 0x840   :  { %1688 = vpow2.f32 %v1464_v57 }
 0x843   :  { %v789_v58 = vpop.f32.mrf.mxu2  ;;  %v802_v59 = vpop.f32.mrf.mxu3 }
 0x846   :  { %v1689_v60 = vpop.eup %1688 }
 0x847   :  { %v809_v61 = vadd.f32 1.0, %v1689_v60 }
 0x849   :  { %1690 = vrcp.f32 %v809_v61  ;;  %v821_v3 = vand.u32 2147483648, %v809_v61  ;;  %v819_v5 = vand.u32 2147483647, %v809_v61  ;;  %vm815_vm12 = vweird.f32 %v809_v61 }
 0x84a   :  { %1692 = vtanh.f32 %v805_v0 }
 0x84b   :  { %v822_v7 = vor.u32 1.1754944e-38, %v821_v3  ;;  %vm820_vm14 = vcmp.eq.f32.partialorder %v819_v5, 8.507059e+37  ;;  %1694 = vpow2.f32 %v1465_v12 }
 0x84f   :  { %v1691_v63 = vpop.eup %1690 }
 0x850   :  { %v811_v1 = vmul.f32 %v1691_v63, %v809_v61  ;;  %vm816_vm11 = vweird.f32 %v1691_v63  ;;  %v1693_v9 = vpop.eup %1692  ;;  %v859_v61 = vld [vmem:[%s2385_s0 + $0x60] sm:$0xff] }
 0x851   :  { %vm817_vm13 = vmor %vm815_vm12, %vm816_vm11  ;;  %v1695_v13 = vpop.eup %1694 }
 0x852   :  { %v812_v2 = vsub.f32 1.0, %v811_v1  ;;  %v829_v14 = vadd.f32 1.0, %v1695_v13 }
 0x854   :  { %v813_v4 = vmul.f32 %v1691_v63, %v812_v2  ;;  %1696 = vrcp.f32 %v829_v14  ;;  %v841_v53 = vand.u32 2147483648, %v829_v14  ;;  %vm835_vm1 = vweird.f32 %v829_v14 }
 0x855   :  { %v839_v54 = vand.u32 2147483647, %v829_v14 }
 0x856   :  { %v814_v6 = vadd.f32 %v1691_v63, %v813_v4  ;;  %v842_v56 = vor.u32 1.1754944e-38, %v841_v53 }
 0x857   :  { %vm840_vm3 = vcmp.eq.f32.partialorder %v839_v54, 8.507059e+37 }
 0x858   :  { %v818_v8 = vsel %vm817_vm13, %v1691_v63, %v814_v6  ;;  %v860_v6 = vld [vmem:[%s2385_s0 + $0x68] sm:$0xff] }
 0x859   :  { %v823_v10 = vsel %vm820_vm14, %v822_v7, %v818_v8 }
 0x85a   :  { %v846_v11 = vmul.f32 %v1693_v9, %v823_v10  ;;  %v1697_v20 = vpop.eup %1696  ;;  %v845_v49 = vmul.f32 %v823_v10, %v2146_v43 }
 0x85b   :  { %v831_v24 = vmul.f32 %v1697_v20, %v829_v14  ;;  %vm836_vm15 = vweird.f32 %v1697_v20 }
 0x85c   :  { %848 = vrot.lane.b32.xlu2 %v846_v11, %s1724_s19  ;;  %vm837_vm2 = vmor %vm835_vm1, %vm836_vm15 }
 0x85d   :  { %v832_v46 = vsub.f32 1.0, %v831_v24 }
 0x85f   :  { %v833_v48 = vmul.f32 %v1697_v20, %v832_v46  ;;  %v1525_v46 = vor.u32 %v1618_v40, %v1522_v41 }
 0x861   :  { %v834_v52 = vadd.f32 %v1697_v20, %v833_v48  ;;  %v1617_v48 = vld [vmem:[%s2382_s3 + $0x14] sm:$0xf0] }
 0x862   :  { %v1513_v54 = vor.u32 %v1617_v48, %v1512_v47 }
 0x863   :  { %v838_v55 = vsel %vm837_vm2, %v1697_v20, %v834_v52 }
 0x864   :  { %v843_v58 = vsel %vm840_vm3, %v842_v56, %v838_v55 }
 0x8b6   :  { %v849_v50 = vpop.permute.xlu2 %848 }
 0x8b7   :  { %v2212_v36 = vadd.f32 %v849_v50, %v845_v49  ;;  %v1616_v50 = vld [vmem:[%s2382_s3 + $0x14] sm:$0xf] }
 0x8b9   :  { %1698 = vtanh.f32 %v2212_v36 }
 0x8bf   :  { %v1699_v57 = vpop.eup %1698 }
 0x8c0   :  { %v2215_v59 = vmul.f32 %v1699_v57, %v843_v58  ;;  %v1504_v57 = vld [vmem:[%s2382_s3] sm:$0xf]  ;;  %v1615_v58 = vld [vmem:[%s2382_s3 + $0x4] sm:$0xf0] }
 0x8c2   :  { %v861_v43 = vpack.c.bf16 %v2215_v59, %v2215_v59 }
 0x8c4   :  { %871 = vrot.lane.b32.xlu0 %v861_v43, %s1724_s19 }
 0x936   :  { %v872_v60 = vpop.permute.xlu0 %871 }
 0x937   :  { %1498 = vmatmul.msk.bf16.vlgmr.msra.gmra.mxu0 %vm80_vm0, %v872_v60  ;;  %1499 = vmatmul.msk.bf16.vlgmr.msra.gmra.mxu1 %vm80_vm0, %v872_v60  ;;  %v1614_v60 = vld [vmem:[%s2382_s3 + $0x4] sm:$0xf] }
 0x9b4   :  { %v925_v62 = vpop.f32.mrf.mxu0  ;;  %v938_v63 = vpop.f32.mrf.mxu1 }
 0x9b5   :  { %v942_v0 = vadd.f32 %v925_v62, %v859_v61  ;;  %v943_v8 = vadd.f32 %v938_v63, %v860_v6  ;;  %v1506_v61 = vld [vmem:[%s2382_s3 + $0x8] sm:$0xf0]  ;;  %v1625_v6 = vld [vmem:[%s2386_s4 + $0x18] sm:$0xff] }
 0x9b6   :  { %1205 = vmatpush.bf16.msrb.mxu0 %v1625_v6 }
 0x9b7   :  { %v1500_v1 = vmul.f32 -1.442695, %v942_v0  ;;  %v1501_v21 = vmul.f32 -1.442695, %v943_v8 }
 0x9b9   :  { %1700 = vpow2.f32 %v1500_v1  ;;  %v1505_v1 = vor.u32 %v1615_v58, %v1504_v57 }
 0x9bc   :  { %v927_v2 = vpop.f32.mrf.mxu0  ;;  %v940_v3 = vpop.f32.mrf.mxu1 }
 0x9bd   :  { %v1509_v3 = vor.u32 %v1614_v60, %v1506_v61 }
 0x9bf   :  { %v1701_v4 = vpop.eup %1700 }
 0x9c0   :  { %v947_v5 = vadd.f32 1.0, %v1701_v4 }
 0x9c2   :  { %1702 = vrcp.f32 %v947_v5  ;;  %v959_v11 = vand.u32 2147483648, %v947_v5  ;;  %v957_v13 = vand.u32 2147483647, %v947_v5  ;;  %vm953_vm5 = vweird.f32 %v947_v5 }
 0x9c3   :  { %1704 = vtanh.f32 %v943_v8  ;;  %v1623_v8 = vld [vmem:[%s2386_s4 + $0x8] sm:$0xff] }
 0x9c4   :  { %v960_v15 = vor.u32 1.1754944e-38, %v959_v11  ;;  %vm958_vm7 = vcmp.eq.f32.partialorder %v957_v13, 8.507059e+37  ;;  %1706 = vpow2.f32 %v1501_v21 }
 0x9c8   :  { %v1703_v7 = vpop.eup %1702 }
 0x9c9   :  { %v949_v9 = vmul.f32 %v1703_v7, %v947_v5  ;;  %vm954_vm4 = vweird.f32 %v1703_v7  ;;  %v1705_v17 = vpop.eup %1704 }
 0x9ca   :  { %vm955_vm6 = vmor %vm953_vm5, %vm954_vm4  ;;  %v1707_v22 = vpop.eup %1706 }
 0x9cb   :  { %v950_v10 = vsub.f32 1.0, %v949_v9  ;;  %v967_v23 = vadd.f32 1.0, %v1707_v22 }
 0x9cd   :  { %v951_v12 = vmul.f32 %v1703_v7, %v950_v10  ;;  %1708 = vrcp.f32 %v967_v23  ;;  %v979_v49 = vand.u32 2147483648, %v967_v23  ;;  %vm973_vm9 = vweird.f32 %v967_v23 }
 0x9ce   :  { %v977_v52 = vand.u32 2147483647, %v967_v23 }
 0x9cf   :  { %v952_v14 = vadd.f32 %v1703_v7, %v951_v12  ;;  %v980_v43 = vor.u32 1.1754944e-38, %v979_v49 }
 0x9d0   :  { %vm978_vm11 = vcmp.eq.f32.partialorder %v977_v52, 8.507059e+37 }
 0x9d1   :  { %v956_v16 = vsel %vm955_vm6, %v1703_v7, %v952_v14  ;;  %v1624_v7 = vld [vmem:[%s2386_s4 + $0x10] sm:$0xff] }
 0x9d2   :  { %v961_v18 = vsel %vm958_vm7, %v960_v15, %v956_v16  ;;  %1206 = vmatpush.bf16.msrb.mxu0 %v1624_v7  ;;  %v997_v15 = vld [vmem:[%s2385_s0 + $0x70] sm:$0xff] }
 0x9d3   :  { %v984_v19 = vmul.f32 %v1705_v17, %v961_v18  ;;  %v1709_v25 = vpop.eup %1708  ;;  %v983_v32 = vmul.f32 %v961_v18, %v2212_v36  ;;  %v1514_v36 = vld [vmem:[%s2382_s3 + $0x18] sm:$0xf0] }
 0x9d4   :  { %v969_v26 = vmul.f32 %v1709_v25, %v967_v23  ;;  %vm974_vm8 = vweird.f32 %v1709_v25  ;;  %v1517_v56 = vor.u32 %v1616_v50, %v1514_v36  ;;  %v2323_v23 = vld [vmem:[%s2387_s5] ss:$0 sm:$0xff] }
 0x9d5   :  { %986 = vrot.lane.b32.xlu1 %v984_v19, %s1724_s19  ;;  %vm2273_vm10 = vmor %vm973_vm9, %vm974_vm8 }
 0x9d6   :  { %v970_v27 = vsub.f32 1.0, %v969_v26  ;;  %1207 = vmatpush.bf16.msrb.mxu0 %v1623_v8 }
 0x9d8   :  { %v971_v29 = vmul.f32 %v1709_v25, %v970_v27 }
 0x9da   :  { %v972_v45 = vadd.f32 %v1709_v25, %v971_v29 }
 0x9dc   :  { %v976_v55 = vsel %vm2273_vm10, %v1709_v25, %v972_v45 }
 0x9dd   :  { %165 = vrot.lane.b32.xlu1 %v1885_v28, %s1724_s19  ;;  %v1621_v28 = vld [vmem:[%s2382_s3 + $0x34] sm:$0xf0]  ;;  %v981_v0 = vsel %vm978_vm11, %v980_v43, %v976_v55 }
 0x9de   :  { %v1529_v20 = vor.u32 %v1621_v28, %v1528_v31  ;;  %v998_v31 = vld [vmem:[%s2385_s0 + $0x78] sm:$0xff] }
 0x9e0   :  { %1058 = vmatpush.bf16.msra.mxu2 %v1529_v20 }
 0x9e4   :  { %1059 = vmatpush.bf16.msra.mxu2 %v1521_v30 }
 0x9e5   :  { %579 = vrot.lane.b32.xlu1 %v2083_v44, %s1724_s19  ;;  %v1620_v44 = vld [vmem:[%s2382_s3 + $0x34] sm:$0xf] }
 0x9e6   :  { %v1533_v39 = vor.u32 %v1620_v44, %v1530_v34 }
 0x9e8   :  { %1071 = vmatpush.bf16.msra.mxu3 %v1533_v39  ;;  %1060 = vmatpush.bf16.msra.mxu2 %v1513_v54 }
 0x9ec   :  { %1072 = vmatpush.bf16.msra.mxu3 %v1525_v46  ;;  %1061 = vmatpush.bf16.msra.mxu2 %v1505_v1 }
 0x9f0   :  { %1073 = vmatpush.bf16.msra.mxu3 %v1517_v56 }
 0x9f4   :  { %1074 = vmatpush.bf16.msra.mxu3 %v1509_v3 }
 0xa47   :  { %v987_v24 = vpop.permute.xlu1 %986 }
 0xa48   :  { %v2258_v42 = vadd.f32 %v987_v24, %v983_v32 }
 0xa4a   :  { %1710 = vtanh.f32 %v2258_v42 }
 0xa4f   :  { %v166_v62 = vpop.permute.xlu1 %165 }
 0xa50   :  { %v1711_v63 = vpop.eup %1710  ;;  %168 = vst.msk [vmem:[#allocation2] sm:$0xff] %vm80_vm0, %v166_v62 }
 0xa51   :  { %v991_v2 = vmul.f32 %v1711_v63, %v981_v0 }
 0xa53   :  { %993 = vrot.lane.b32.xlu1 %v991_v2, %s1724_s19  ;;  %v999_v4 = vpack.c.bf16 %v991_v2, %v991_v2 }
 0xa55   :  { %1009 = vrot.lane.b32.xlu2 %v999_v4, %s1724_s19 }
 0xa57   :  { %v580_v5 = vpop.permute.xlu1 %579  ;;  %v1141_v11 = vld [vmem:[#allocation2] sm:$0xff] }
 0xa58   :  { %582 = vst.msk [vmem:[#allocation2 + $0x18] sm:$0xff] %vm80_vm0, %v580_v5 }
 0xa5d   :  { %303 = vrot.lane.b32.xlu2 %v1951_v33, %s1724_s19  ;;  %v1622_v33 = vld [vmem:[%s2386_s4] sm:$0xff] }
 0xa5e   :  { %1208 = vmatpush.bf16.msrb.mxu0 %v1622_v33 }
 0xa5f   :  { %v1144_v2 = vld [vmem:[#allocation2 + $0x18] sm:$0xff] }
 0xa65   :  { %717 = vrot.lane.b32.xlu2 %v2149_v51, %s1724_s19 }
 0xaaf   :  { %v1010_v51 = vpop.permute.xlu2 %1009 }
 0xab0   :  { %1534 = vmatmul.msk.bf16.vlgmr.msra.gmra.mxu2 %vm80_vm0, %v1010_v51  ;;  %1535 = vmatmul.msk.bf16.vlgmr.msra.gmra.mxu3 %vm80_vm0, %v1010_v51 }
 0xab7   :  { %v304_v9 = vpop.permute.xlu2 %303 }
 0xab8   :  { %306 = vst.msk [vmem:[#allocation2 + $0x8] sm:$0xff] %vm80_vm0, %v304_v9 }
 0xabf   :  { %v718_v10 = vpop.permute.xlu2 %717  ;;  %v1142_v12 = vld [vmem:[#allocation2 + $0x8] sm:$0xff] }
 0xac0   :  { %720 = vst.msk [vmem:[#allocation2 + $0x20] sm:$0xff] %vm80_vm0, %v718_v10  ;;  %v1149_v13 = vpack.c.bf16 %v1142_v12, %v1141_v11 }
 0xac2   :  { %1554 = vmatmul.msk.bf16.vlgmr.msrb.gmra.mxu0 %vm80_vm0, %v1149_v13 }
 0xac5   :  { %v994_v14 = vpop.permute.xlu1 %993 }
 0xac6   :  { %996 = vst.msk [vmem:[#allocation2 + $0x30] sm:$0xff] %vm80_vm0, %v994_v14 }
 0xac7   :  { %v1145_v5 = vld [vmem:[#allocation2 + $0x20] sm:$0xff] }
 0xacd   :  { %v1147_v8 = vld [vmem:[#allocation2 + $0x30] sm:$0xff] }
 0xb33   :  { %v1063_v16 = vpop.f32.mrf.mxu2  ;;  %v1076_v17 = vpop.f32.mrf.mxu3 }
 0xb34   :  { %v1080_v18 = vadd.f32 %v1063_v16, %v997_v15  ;;  %v1081_v44 = vadd.f32 %v1076_v17, %v998_v31 }
 0xb36   :  { %v1536_v19 = vmul.f32 -1.442695, %v1080_v18  ;;  %v1537_v48 = vmul.f32 -1.442695, %v1081_v44 }
 0xb38   :  { %1712 = vpow2.f32 %v1536_v19 }
 0xb3b   :  { %v1065_v21 = vpop.f32.mrf.mxu2  ;;  %v1078_v22 = vpop.f32.mrf.mxu3 }
 0xb3e   :  { %v1713_v25 = vpop.eup %1712 }
 0xb3f   :  { %v1085_v26 = vadd.f32 1.0, %v1713_v25  ;;  %v1210_v27 = vpop.f32.mrf.mxu0 }
 0xb40   :  { %v1211_v29 = vadd.f32 %v2323_v23, %v1210_v27 }
 0xb41   :  { %1714 = vrcp.f32 %v1085_v26  ;;  %v1097_v37 = vand.u32 2147483648, %v1085_v26  ;;  %v1095_v39 = vand.u32 2147483647, %v1085_v26  ;;  %vm1091_vm13 = vweird.f32 %v1085_v26 }
 0xb42   :  { %1230 = vst [vmem:[%s2388_s6] sm:$0xff] %v1211_v29  ;;  %1716 = vtanh.f32 %v1081_v44 }
 0xb43   :  { %v1098_v41 = vor.u32 1.1754944e-38, %v1097_v37  ;;  %vm1096_vm15 = vcmp.eq.f32.partialorder %v1095_v39, 8.507059e+37  ;;  %1718 = vpow2.f32 %v1537_v48 }
 0xb47   :  { %v1715_v28 = vpop.eup %1714  ;;  %v1212_v32 = vpop.f32.mrf.mxu0 }
 0xb48   :  { %v1087_v20 = vmul.f32 %v1715_v28, %v1085_v26  ;;  %v1213_v34 = vadd.f32 %v2323_v23, %v1212_v32  ;;  %vm1092_vm12 = vweird.f32 %v1715_v28  ;;  %v1717_v45 = vpop.eup %1716 }
 0xb49   :  { %vm1093_vm14 = vmor %vm1091_vm13, %vm1092_vm12  ;;  %v1719_v49 = vpop.eup %1718 }
 0xb4a   :  { %1231 = vst [vmem:[%s2388_s6 + $0x8] sm:$0xff] %v1213_v34  ;;  %v1088_v35 = vsub.f32 1.0, %v1087_v20  ;;  %v1105_v50 = vadd.f32 1.0, %v1719_v49 }
 0xb4c   :  { %v1089_v24 = vmul.f32 %v1715_v28, %v1088_v35  ;;  %1720 = vrcp.f32 %v1105_v50  ;;  %vm1111_vm2 = vweird.f32 %v1105_v50 }
 0xb4e   :  { %v1090_v40 = vadd.f32 %v1715_v28, %v1089_v24 }
 0xb50   :  { %v1094_v30 = vsel %vm1093_vm14, %v1715_v28, %v1090_v40 }
 0xb51   :  { %v1099_v46 = vsel %vm1096_vm15, %v1098_v41, %v1094_v30 }
 0xb52   :  { %v1122_v47 = vmul.f32 %v1717_v45, %v1099_v46  ;;  %v1721_v36 = vpop.eup %1720  ;;  %v1121_v55 = vmul.f32 %v1099_v46, %v2258_v42 }
 0xb53   :  { %v1107_v52 = vmul.f32 %v1721_v36, %v1105_v50  ;;  %vm1112_vm1 = vweird.f32 %v1721_v36 }
 0xb54   :  { %1124 = vrot.lane.b32.xlu0 %v1122_v47, %s1724_s19  ;;  %vm1113_vm3 = vmor %vm1111_vm2, %vm1112_vm1 }
 0xb55   :  { %v1108_v53 = vsub.f32 1.0, %v1107_v52 }
 0xb57   :  { %v1109_v54 = vmul.f32 %v1721_v36, %v1108_v53 }
 0xb59   :  { %v1110_v58 = vadd.f32 %v1721_v36, %v1109_v54 }
 0xb5b   :  { %v1114_v43 = vsel %vm1113_vm3, %v1721_v36, %v1110_v58 }
 0xb5c   :  { %441 = vrot.lane.b32.xlu0 %v2017_v38, %s1724_s19  ;;  %v1117_v38 = vand.u32 2147483648, %v1105_v50 }
 0xb5e   :  { %v1118_v60 = vor.u32 1.1754944e-38, %v1117_v38 }
 0xb64   :  { %855 = vrot.lane.b32.xlu0 %v2215_v59, %s1724_s19  ;;  %v1115_v59 = vand.u32 2147483647, %v1105_v50 }
 0xb66   :  { %vm1116_vm4 = vcmp.eq.f32.partialorder %v1115_v59, 8.507059e+37 }
 0xb67   :  { %v1119_v63 = vsel %vm1116_vm4, %v1118_v60, %v1114_v43 }
 0xbc6   :  { %v1125_v56 = vpop.permute.xlu0 %1124 }
 0xbc7   :  { %v1127_v57 = vadd.f32 %v1125_v56, %v1121_v55 }
 0xbc9   :  { %1722 = vtanh.f32 %v1127_v57  ;;  %1137 = vrot.lane.b32.xlu0 %v1127_v57, %s1724_s19 }
 0xbce   :  { %v442_v61 = vpop.permute.xlu0 %441 }
 0xbcf   :  { %v1723_v62 = vpop.eup %1722  ;;  %444 = vst.msk [vmem:[#allocation2 + $0x10] sm:$0xff] %vm80_vm0, %v442_v61 }
 0xbd0   :  { %v1129_v42 = vmul.f32 %v1723_v62, %v1119_v63 }
 0xbd2   :  { %1131 = vrot.lane.b32.xlu2 %v1129_v42, %s1724_s19 }
 0xbd6   :  { %v856_v0 = vpop.permute.xlu0 %855  ;;  %v1143_v1 = vld [vmem:[#allocation2 + $0x10] sm:$0xff] }
 0xbd7   :  { %858 = vst.msk [vmem:[#allocation2 + $0x28] sm:$0xff] %vm80_vm0, %v856_v0  ;;  %v1150_v3 = vpack.c.bf16 %v1144_v2, %v1143_v1 }
 0xbd9   :  { %1555 = vmatmul.msk.bf16.gmra.mxu0 %vm80_vm0, %v1150_v3 }
 0xbde   :  { %v1146_v4 = vld [vmem:[#allocation2 + $0x28] sm:$0xff] }
 0xbdf   :  { %v1151_v6 = vpack.c.bf16 %v1146_v4, %v1145_v5 }
 0xbe9   :  { %1556 = vmatmul.msk.bf16.gmra.mxu0 %vm80_vm0, %v1151_v6 }
 0xc2c   :  { %v1132_v7 = vpop.permute.xlu2 %1131 }
 0xc2d   :  { %1134 = vst.msk [vmem:[#allocation2 + $0x38] sm:$0xff] %vm80_vm0, %v1132_v7 }
 0xc2e   :  { %1135 = vst.msk [vmem:[%s2389_s7] sm:$0xff] %vm80_vm0, %v1132_v7 }
 0xc34   :  { %v1148_v33 = vld [vmem:[#allocation2 + $0x38] sm:$0xff] }
 0xc35   :  { %v1152_v51 = vpack.c.bf16 %v1148_v33, %v1147_v8 }
 0xc37   :  { %1557 = vmatmul.msk.bf16.gmra.mxu0 %vm80_vm0, %v1152_v51 }
 0xc3b   :  { %v1138_v9 = vpop.permute.xlu0 %1137 }
 0xc3c   :  { %1140 = vst.msk [vmem:[%s2390_s8] sm:$0xff] %vm80_vm0, %v1138_v9 }
 0xc56   :  { %v1215_v10 = vpop.f32.mrf.mxu0 }
 0xc57   :  { %v1216_v11 = vadd.f32 %v2323_v23, %v1215_v10 }
 0xc59   :  { %1232 = vst [vmem:[%s2388_s6 + $0x10] sm:$0xff] %v1216_v11 }
 0xc5e   :  { %v1217_v12 = vpop.f32.mrf.mxu0 }
 0xc5f   :  { %v1218_v13 = vadd.f32 %v2323_v23, %v1217_v12 }
 0xc61   :  { %1233 = vst [vmem:[%s2388_s6 + $0x18] sm:$0xff] %v1218_v13 }
 0xc66   :  { %v1220_v14 = vpop.f32.mrf.mxu0 }
 0xc67   :  { %v1221_v15 = vadd.f32 %v2323_v23, %v1220_v14 }
 0xc69   :  { %1234 = vst [vmem:[%s2388_s6 + $0x20] sm:$0xff] %v1221_v15 }
 0xc6e   :  { %v1222_v16 = vpop.f32.mrf.mxu0 }
 0xc6f   :  { %v1223_v17 = vadd.f32 %v2323_v23, %v1222_v16 }
 0xc71   :  { %1235 = vst [vmem:[%s2388_s6 + $0x28] sm:$0xff] %v1223_v17 }
 0xcb4   :  { %v1225_v18 = vpop.f32.mrf.mxu0 }
 0xcb5   :  { %v1226_v19 = vadd.f32 %v2323_v23, %v1225_v18 }
 0xcb7   :  { %1236 = vst [vmem:[%s2388_s6 + $0x30] sm:$0xff] %v1226_v19 }
 0xcbc   :  { %v1227_v21 = vpop.f32.mrf.mxu0 }
 0xcbd   :  { %v1228_v22 = vadd.f32 %v2323_v23, %v1227_v21 }
 0xcbf   :  { %1237 = vst [vmem:[%s2388_s6 + $0x38] sm:$0xff] %v1228_v22 }

</bundles_post_ra>
